<compile_context>
chip_gen: v5e
topology: v5e:2x2
jax: 0.10.0
libtpu: 0.0.40
codegen_flags: <defaults>
</compile_context>

<pallas_src>
import jax
import jax.numpy as jnp
from jax.experimental import pallas as pl
from jax.experimental.pallas import tpu as pltpu

IN_DIM = 25
HIDDEN = 256
OUT_DIM = 1
LANE_PAD = 128   # final-layer matmul width (one full lane tile)


def _round_up(n, m):
    return ((n + m - 1) // m) * m


def _mlp_kernel(x_ref,
                w1_ref, b1_ref,
                w2_ref, b2_ref,
                w3_ref, b3_ref,
                w4_ref, b4_ref,
                o_ref):
    """Whole 4-layer MLP forward for one batch tile, entirely in VMEM.

    Weights w1..w4 are bf16 (MXU fast path); biases, accumulation and ReLU are
    f32.  o_ref is (1, tile_m): one lane-major output value per batch row.
    """
    bf16 = jnp.bfloat16
    f32 = jnp.float32

    h = jnp.dot(x_ref[...].astype(bf16), w1_ref[...],
                preferred_element_type=f32) + b1_ref[...]
    h = jnp.maximum(h, 0.0)

    h = jnp.dot(h.astype(bf16), w2_ref[...],
                preferred_element_type=f32) + b2_ref[...]
    h = jnp.maximum(h, 0.0)

    h = jnp.dot(h.astype(bf16), w3_ref[...],
                preferred_element_type=f32) + b3_ref[...]
    h = jnp.maximum(h, 0.0)

    # Final layer against w4 zero-padded to [256, 128]; only column 0 is real.
    out = jnp.dot(h.astype(bf16), w4_ref[...],
                  preferred_element_type=f32) + b4_ref[...]

    # (tile_m, 128) -> (128, tile_m) on the XLU, keep only the real row: a
    # lane-dense (1, tile_m) slab, i.e. one value per batch row in lane order.
    out_t = jnp.transpose(out)
    o_ref[...] = out_t[0:1, :].astype(o_ref.dtype)


def prepare_params(params):
    """One-time weight preparation (hoisted out of the per-call path):
    bf16 MXU weights, f32 biases, final layer padded to a full 128-lane tile.
    Re-run after any weight update."""
    bf16 = jnp.bfloat16
    f32 = jnp.float32
    return {
        "w1": params["w1"].astype(bf16),                                 # [25, 256]
        "w2": params["w2"].astype(bf16),                                 # [256, 256]
        "w3": params["w3"].astype(bf16),                                 # [256, 256]
        "w4": jnp.pad(params["w4"],
                      ((0, 0), (0, LANE_PAD - OUT_DIM))).astype(bf16),   # [256, 128]
        "b1": params["b1"].astype(f32),                                  # [1, 256]
        "b2": params["b2"].astype(f32),
        "b3": params["b3"].astype(f32),
        "b4": jnp.pad(params["b4"],
                      ((0, 0), (0, LANE_PAD - OUT_DIM))).astype(f32),    # [1, 128]
    }


def classifier_forward(x, prepared, *, tile_m=512):
    """x: [B, 25] float (f32 or bf16).  prepared: prepare_params(...) output.

    Returns [B, 1] float32.
    """
    B = x.shape[0]

    # MXU/lane-aligned batch tile.  Guarantee >= 2 grid steps whenever
    # B > 128 so the "parallel" batch axis can use both v7x TensorCores.
    tile_m = _round_up(min(max(tile_m, 128), 1024), 128)
    if B > 128:
        tile_m = min(tile_m, _round_up(pl.cdiv(B, 2), 128))
    else:
        tile_m = 128
    grid_m = pl.cdiv(B, tile_m)   # ragged last block handled by Pallas masking

    w1, b1 = prepared["w1"], prepared["b1"]
    w2, b2 = prepared["w2"], prepared["b2"]
    w3, b3 = prepared["w3"], prepared["b3"]
    w4, b4 = prepared["w4"], prepared["b4"]

    # Weights/biases use constant index maps -> fetched once, VMEM-resident
    # across all grid steps (~0.2 MB bf16 total).
    full = lambda a: pl.BlockSpec(a.shape, lambda i: (0, 0))

    weight_bytes = sum(int(a.size) * a.dtype.itemsize
                       for a in (w1, b1, w2, b2, w3, b3, w4, b4))
    cost = pl.CostEstimate(
        flops=2 * B * HIDDEN * (IN_DIM + HIDDEN + HIDDEN + OUT_DIM),
        transcendentals=0,
        bytes_accessed=int(x.size) * x.dtype.itemsize + B * 4 + weight_bytes,
    )

    out = pl.pallas_call(
        _mlp_kernel,
        out_shape=jax.ShapeDtypeStruct((1, B), jnp.float32),
        grid_spec=pltpu.PrefetchScalarGridSpec(
            num_scalar_prefetch=0,
            grid=(grid_m,),
            in_specs=[
                pl.BlockSpec((tile_m, IN_DIM), lambda i: (i, 0)),   # x tile
                full(w1), full(b1),
                full(w2), full(b2),
                full(w3), full(b3),
                full(w4), full(b4),
            ],
            out_specs=pl.BlockSpec((1, tile_m), lambda i: (0, i)),
        ),
        compiler_params=pltpu.CompilerParams(
            dimension_semantics=("parallel",),   # batch tiles shard across TCs
        ),
        cost_estimate=cost,
    )(x, w1, b1, w2, b2, w3, b3, w4, b4)

    # (1, B) lane-major -> [B, 1]; row-major-compatible reshape (no HBM pass).
    return out.reshape(B, OUT_DIM)


def init_params(key):
    """Deterministic init mirroring nn.Linear's U(-1/sqrt(fan_in), 1/sqrt(fan_in)).

    Weights are stored already transposed to [in, out] for the kernel, in f32.
    """
    dims = [(IN_DIM, HIDDEN), (HIDDEN, HIDDEN), (HIDDEN, HIDDEN), (HIDDEN, OUT_DIM)]
    params = {}
    for idx, (fan_in, fan_out) in enumerate(dims, start=1):
        key, kw, kb = jax.random.split(key, 3)
        bound = 1.0 / jnp.sqrt(jnp.float32(fan_in))
        params[f"w{idx}"] = jax.random.uniform(
            kw, (fan_in, fan_out), jnp.float32, minval=-bound, maxval=bound)
        params[f"b{idx}"] = jax.random.uniform(
            kb, (1, fan_out), jnp.float32, minval=-bound, maxval=bound)
    return params


def reference_forward_f32(x, params):
    h = jnp.maximum(x @ params["w1"] + params["b1"], 0.0)
    h = jnp.maximum(h @ params["w2"] + params["b2"], 0.0)
    h = jnp.maximum(h @ params["w3"] + params["b3"], 0.0)
    return h @ params["w4"] + params["b4"]


def reference_forward_bf16(x, params):
    """Same bf16-input / f32-accumulate recipe as the kernel, in plain XLA."""
    bf16 = jnp.bfloat16

    def lin(h, w, b):
        return jnp.dot(h.astype(bf16), w.astype(bf16),
                       preferred_element_type=jnp.float32) + b

    h = jnp.maximum(lin(x, params["w1"], params["b1"]), 0.0)
    h = jnp.maximum(lin(h, params["w2"], params["b2"]), 0.0)
    h = jnp.maximum(lin(h, params["w3"], params["b3"]), 0.0)
    return lin(h, params["w4"], params["b4"])


if __name__ == "__main__":
    key = jax.random.PRNGKey(0)
    key, kx = jax.random.split(key)

    # B intentionally not a multiple of the batch tile: exercises the ragged
    # last block and yields a 2-step grid (v7x megacore path).
    B = 300
    x = jax.random.normal(kx, (B, IN_DIM), jnp.float32)
    params = init_params(key)

    # One-time weight prep (bf16 cast + lane padding), reused across calls.
    prepared = prepare_params(params)

    fwd = jax.jit(lambda xx: classifier_forward(xx, prepared))
    out = jax.block_until_ready(fwd(x))
    assert out.shape == (B, OUT_DIM), out.shape

    # Tight check against an XLA reference using the same bf16 matmul recipe.
    ref_bf16 = reference_forward_bf16(x, params)
    err_bf16 = float(jnp.max(jnp.abs(out - ref_bf16)))
    assert jnp.allclose(out, ref_bf16, atol=1e-2, rtol=1e-2), err_bf16

    # Loose check against the full-f32 reference (bf16 rounding of inputs).
    ref_f32 = reference_forward_f32(x, params)
    err_f32 = float(jnp.max(jnp.abs(out - ref_f32)))
    assert jnp.allclose(out, ref_f32, atol=5e-2, rtol=5e-2), err_f32

    print("KERNEL_OK")
</pallas_src>

<mosaic_0001>
module attributes {stable_mosaic.version = 11 : i64} {
  func.func @_mlp_kernel(%arg0: i32, %arg1: memref<256x25xf32, #tpu.memory_space<vmem>>, %arg2: memref<25x256xbf16, #tpu.memory_space<vmem>>, %arg3: memref<1x256xf32, #tpu.memory_space<vmem>>, %arg4: memref<256x256xbf16, #tpu.memory_space<vmem>>, %arg5: memref<1x256xf32, #tpu.memory_space<vmem>>, %arg6: memref<256x256xbf16, #tpu.memory_space<vmem>>, %arg7: memref<1x256xf32, #tpu.memory_space<vmem>>, %arg8: memref<256x128xbf16, #tpu.memory_space<vmem>>, %arg9: memref<1x128xf32, #tpu.memory_space<vmem>>, %arg10: memref<1x256xf32, #tpu.memory_space<vmem>>) attributes {dimension_semantics = [#tpu.dimension_semantics<parallel>], iteration_bounds = array<i64: 2>, scalar_prefetch = 0 : i64, scratch_operands = 0 : i64, tpu.core_type = #tpu.core_type<tc>, window_params = [{transform_indices = @transform_0, window_bounds = array<i64: 256, 25>}, {pipeline_mode = #tpu.pipeline_mode<synchronous>, transform_indices = @transform_1, window_bounds = array<i64: 25, 256>}, {pipeline_mode = #tpu.pipeline_mode<synchronous>, transform_indices = @transform_2, window_bounds = array<i64: 1, 256>}, {pipeline_mode = #tpu.pipeline_mode<synchronous>, transform_indices = @transform_3, window_bounds = array<i64: 256, 256>}, {pipeline_mode = #tpu.pipeline_mode<synchronous>, transform_indices = @transform_4, window_bounds = array<i64: 1, 256>}, {pipeline_mode = #tpu.pipeline_mode<synchronous>, transform_indices = @transform_5, window_bounds = array<i64: 256, 256>}, {pipeline_mode = #tpu.pipeline_mode<synchronous>, transform_indices = @transform_6, window_bounds = array<i64: 1, 256>}, {pipeline_mode = #tpu.pipeline_mode<synchronous>, transform_indices = @transform_7, window_bounds = array<i64: 256, 128>}, {pipeline_mode = #tpu.pipeline_mode<synchronous>, transform_indices = @transform_8, window_bounds = array<i64: 1, 128>}, {transform_indices = @transform_9, window_bounds = array<i64: 1, 256>}]} {
    %c0 = arith.constant 0 : index
    %c0_0 = arith.constant 0 : index
    %0 = vector.load %arg1[%c0, %c0_0] : memref<256x25xf32, #tpu.memory_space<vmem>>, vector<256x25xf32>
    %1 = arith.truncf %0 : vector<256x25xf32> to vector<256x25xbf16>
    %c0_1 = arith.constant 0 : index
    %c0_2 = arith.constant 0 : index
    %2 = vector.load %arg2[%c0_1, %c0_2] : memref<25x256xbf16, #tpu.memory_space<vmem>>, vector<25x256xbf16>
    %cst = arith.constant dense<0.000000e+00> : vector<256x256xf32>
    %3 = tpu.matmul %1, %2, %cst {dimension_numbers = #tpu.dot_dimension_numbers<[1], [0], [0], [1], [0, 0, 1, 1], [], []>} : vector<256x25xbf16>, vector<25x256xbf16>, vector<256x256xf32> -> vector<256x256xf32>
    %c0_3 = arith.constant 0 : index
    %c0_4 = arith.constant 0 : index
    %4 = vector.load %arg3[%c0_3, %c0_4] : memref<1x256xf32, #tpu.memory_space<vmem>>, vector<1x256xf32>
    %5 = vector.broadcast %4 : vector<1x256xf32> to vector<256x256xf32>
    %6 = arith.addf %3, %5 : vector<256x256xf32>
    %cst_5 = arith.constant 0.000000e+00 : f32
    %7 = vector.broadcast %cst_5 : f32 to vector<256x256xf32>
    %8 = arith.maximumf %6, %7 : vector<256x256xf32>
    %9 = arith.truncf %8 : vector<256x256xf32> to vector<256x256xbf16>
    %c0_6 = arith.constant 0 : index
    %c0_7 = arith.constant 0 : index
    %10 = vector.load %arg4[%c0_6, %c0_7] : memref<256x256xbf16, #tpu.memory_space<vmem>>, vector<256x256xbf16>
    %cst_8 = arith.constant dense<0.000000e+00> : vector<256x256xf32>
    %11 = tpu.matmul %9, %10, %cst_8 {dimension_numbers = #tpu.dot_dimension_numbers<[1], [0], [0], [1], [0, 0, 1, 1], [], []>} : vector<256x256xbf16>, vector<256x256xbf16>, vector<256x256xf32> -> vector<256x256xf32>
    %c0_9 = arith.constant 0 : index
    %c0_10 = arith.constant 0 : index
    %12 = vector.load %arg5[%c0_9, %c0_10] : memref<1x256xf32, #tpu.memory_space<vmem>>, vector<1x256xf32>
    %13 = vector.broadcast %12 : vector<1x256xf32> to vector<256x256xf32>
    %14 = arith.addf %11, %13 : vector<256x256xf32>
    %cst_11 = arith.constant 0.000000e+00 : f32
    %15 = vector.broadcast %cst_11 : f32 to vector<256x256xf32>
    %16 = arith.maximumf %14, %15 : vector<256x256xf32>
    %17 = arith.truncf %16 : vector<256x256xf32> to vector<256x256xbf16>
    %c0_12 = arith.constant 0 : index
    %c0_13 = arith.constant 0 : index
    %18 = vector.load %arg6[%c0_12, %c0_13] : memref<256x256xbf16, #tpu.memory_space<vmem>>, vector<256x256xbf16>
    %cst_14 = arith.constant dense<0.000000e+00> : vector<256x256xf32>
    %19 = tpu.matmul %17, %18, %cst_14 {dimension_numbers = #tpu.dot_dimension_numbers<[1], [0], [0], [1], [0, 0, 1, 1], [], []>} : vector<256x256xbf16>, vector<256x256xbf16>, vector<256x256xf32> -> vector<256x256xf32>
    %c0_15 = arith.constant 0 : index
    %c0_16 = arith.constant 0 : index
    %20 = vector.load %arg7[%c0_15, %c0_16] : memref<1x256xf32, #tpu.memory_space<vmem>>, vector<1x256xf32>
    %21 = vector.broadcast %20 : vector<1x256xf32> to vector<256x256xf32>
    %22 = arith.addf %19, %21 : vector<256x256xf32>
    %cst_17 = arith.constant 0.000000e+00 : f32
    %23 = vector.broadcast %cst_17 : f32 to vector<256x256xf32>
    %24 = arith.maximumf %22, %23 : vector<256x256xf32>
    %25 = arith.truncf %24 : vector<256x256xf32> to vector<256x256xbf16>
    %c0_18 = arith.constant 0 : index
    %c0_19 = arith.constant 0 : index
    %26 = vector.load %arg8[%c0_18, %c0_19] : memref<256x128xbf16, #tpu.memory_space<vmem>>, vector<256x128xbf16>
    %cst_20 = arith.constant dense<0.000000e+00> : vector<256x128xf32>
    %27 = tpu.matmul %25, %26, %cst_20 {dimension_numbers = #tpu.dot_dimension_numbers<[1], [0], [0], [1], [0, 0, 1, 1], [], []>} : vector<256x256xbf16>, vector<256x128xbf16>, vector<256x128xf32> -> vector<256x128xf32>
    %c0_21 = arith.constant 0 : index
    %c0_22 = arith.constant 0 : index
    %28 = vector.load %arg9[%c0_21, %c0_22] : memref<1x128xf32, #tpu.memory_space<vmem>>, vector<1x128xf32>
    %29 = vector.broadcast %28 : vector<1x128xf32> to vector<256x128xf32>
    %30 = arith.addf %27, %29 : vector<256x128xf32>
    %31 = tpu.transpose %30, [1, 0] : vector<256x128xf32> -> vector<128x256xf32>
    %32 = vector.extract_strided_slice %31 {offsets = [0, 0], sizes = [1, 256], strides = [1, 1]} : vector<128x256xf32> to vector<1x256xf32>
    %c0_23 = arith.constant 0 : index
    %c0_24 = arith.constant 0 : index
    %33 = vector.load %arg10[%c0_23, %c0_24] : memref<1x256xf32, #tpu.memory_space<vmem>>, vector<1x256xf32>
    tpu.vector_store %arg10[%c0_23, %c0_24], %32 {strides = array<i32>} : memref<1x256xf32, #tpu.memory_space<vmem>>, vector<1x256xf32>,
    return
  }
  func.func @transform_0(%arg0: i32) -> (i32, i32) {
    %c0_i32 = arith.constant 0 : i32
    %c0_i32_0 = arith.constant 0 : i32
    return %arg0, %c0_i32 : i32, i32
  }
  func.func @transform_1(%arg0: i32) -> (i32, i32) {
    %c0_i32 = arith.constant 0 : i32
    %c0_i32_0 = arith.constant 0 : i32
    %c0_i32_1 = arith.constant 0 : i32
    return %c0_i32, %c0_i32_0 : i32, i32
  }
  func.func @transform_2(%arg0: i32) -> (i32, i32) {
    %c0_i32 = arith.constant 0 : i32
    %c0_i32_0 = arith.constant 0 : i32
    %c0_i32_1 = arith.constant 0 : i32
    return %c0_i32, %c0_i32_0 : i32, i32
  }
  func.func @transform_3(%arg0: i32) -> (i32, i32) {
    %c0_i32 = arith.constant 0 : i32
    %c0_i32_0 = arith.constant 0 : i32
    %c0_i32_1 = arith.constant 0 : i32
    return %c0_i32, %c0_i32_0 : i32, i32
  }
  func.func @transform_4(%arg0: i32) -> (i32, i32) {
    %c0_i32 = arith.constant 0 : i32
    %c0_i32_0 = arith.constant 0 : i32
    %c0_i32_1 = arith.constant 0 : i32
    return %c0_i32, %c0_i32_0 : i32, i32
  }
  func.func @transform_5(%arg0: i32) -> (i32, i32) {
    %c0_i32 = arith.constant 0 : i32
    %c0_i32_0 = arith.constant 0 : i32
    %c0_i32_1 = arith.constant 0 : i32
    return %c0_i32, %c0_i32_0 : i32, i32
  }
  func.func @transform_6(%arg0: i32) -> (i32, i32) {
    %c0_i32 = arith.constant 0 : i32
    %c0_i32_0 = arith.constant 0 : i32
    %c0_i32_1 = arith.constant 0 : i32
    return %c0_i32, %c0_i32_0 : i32, i32
  }
  func.func @transform_7(%arg0: i32) -> (i32, i32) {
    %c0_i32 = arith.constant 0 : i32
    %c0_i32_0 = arith.constant 0 : i32
    %c0_i32_1 = arith.constant 0 : i32
    return %c0_i32, %c0_i32_0 : i32, i32
  }
  func.func @transform_8(%arg0: i32) -> (i32, i32) {
    %c0_i32 = arith.constant 0 : i32
    %c0_i32_0 = arith.constant 0 : i32
    %c0_i32_1 = arith.constant 0 : i32
    return %c0_i32, %c0_i32_0 : i32, i32
  }
  func.func @transform_9(%arg0: i32) -> (i32, i32) {
    %c0_i32 = arith.constant 0 : i32
    %c0_i32_0 = arith.constant 0 : i32
    return %c0_i32, %arg0 : i32, i32
  }
}

</mosaic_0001>

<bundles_post_ra>
// kernel: _lambda_.1
= control target key start
LH: loop header
LB: loop body
LE: loop exit
PB: predicated region body
PF: predicated region fallthrough
CT: control target
= control target key end

     0   :  { %14 = vsyncpa [#allocation3], 0  ;;  %s4323_s0 = inlined_call_operand.vmem [shape: f32[300,25], index: 0, kind: input, shape index: {}]   ;;  %s4324_s1 = inlined_call_operand.hbm [shape: bf16[25,256], index: 1, kind: input, shape index: {}]   ;;  %s4325_s2 = inlined_call_operand.vmem [shape: f32[1,256], index: 2, kind: input, shape index: {}]   ;;  %s4326_s3 = inlined_call_operand.hbm [shape: bf16[256,256], index: 3, kind: input, shape index: {}]   ;;  %s4327_s4 = inlined_call_operand.vmem [shape: f32[1,256], index: 4, kind: input, shape index: {}]   ;;  %s4328_s5 = inlined_call_operand.vmem [shape: bf16[256,256], index: 5, kind: input, shape index: {}]   ;;  %s4329_s6 = inlined_call_operand.vmem [shape: f32[1,256], index: 6, kind: input, shape index: {}]   ;;  %s4330_s7 = inlined_call_operand.vmem [shape: bf16[256,128], index: 7, kind: input, shape index: {}]   ;;  %s4331_s8 = inlined_call_operand.vmem [shape: f32[1,128], index: 8, kind: input, shape index: {}]   ;;  %s4332_s9 = inlined_call_operand.hbm [shape: f32[1,300], index: 9, kind: output, shape index: {}]  }
   0x1   :  { %15 = vsyncpa [#allocation6], 0 }
   0x2   :  { %16 = vsyncpa [#allocation4], 0 }
   0x3   :  { %18 = vsyncpa [#allocation4 + $0x1], 0  ;;  %s3318_s30 = smov 0   ;;  %s3320_s10 = smov 0  }
   0x4   :  { %s3322_s11 = smov 0   ;;  %s3324_s12 = smov 0  }
   0x5 LB: > { %s3339_s13 = sadd.s32 4294967295, %s3260_s12   ;;  %s2588_s14 = sadd.s32 4294967294, %s3260_s12   ;;  %s3260_s12 = sphi %s3324_s12, %s4346_s12   ;;  %s3256_s11 = sphi %s3322_s11, %s4345_s11   ;;  %s3252_s10 = sphi %s3320_s10, %s4344_s10   ;;  %s3248_s30 = sphi %s3318_s30, %s4343_s30  }
   0x6   : > { %s3343_s15 = sadd.s32 1, %s3260_s12   ;;  %s225_s16 = sadd.s32 1, %s3256_s11 }
   0x7   : > { %s222_s17 = ssub.s32 %s3260_s12, %s3343_s15  ;;  %p235_p0 = scmp.ne.s32.totalorder %s3256_s11, %s3252_s10 }
   0x8   : > { %p223_p1 = scmp.eq.s32.totalorder %s222_s17, 0  ;;  %p236_p2 = scmp.eq.s32.totalorder %s3339_s13, 1 }
   0x9   : > { %p241_p3 = scmp.ne.s32.totalorder %s3252_s10, %s3248_s30  ;;  %p242_p4 = scmp.eq.s32.totalorder %s2588_s14, 1 }
   0xa   : > { %s3354_s18 = scalar_select %p223_p1, %s3256_s11, %s225_s16  }
   0xb   : > { %p3356_p5 = por %p236_p2, %p235_p0  ;;  %p3360_p6 = por %p242_p4, %p241_p3 }
   0xc   : > { %p2589_p7 = scmp.ge.s32.totalorder %s3260_s12, 1  ;;  %p249_p8 = scmp.lt.s32.totalorder %s3260_s12, 3 }
   0xd   : > { %p3076_p9 = scmp.eq.s32.totalorder %s3339_s13, 0  ;;  %s260_s24 = sshll.u32 %s4324_s1, 4  ;;  %s261_s24 = int_to_ptr.hbm [resolvable:$true] %s260_s24 }
   0xe   : > { %p3367_p10 = pnand %p2589_p7, %p249_p8  ;;  %s3262_s25 = smov [#allocation2]  }
   0xf   : > { %s262_s26 = sshll.u32 %s3262_s25, 4  ;;  %s277_s29 = sshll.u32 %s4326_s3, 4  ;;  %s263_s26 = int_to_ptr.vmem [resolvable:$true] %s262_s26  ;;  %s278_s29 = int_to_ptr.hbm [resolvable:$true] %s277_s29 }
  0x10   : > { %p3065_p11 = pneg %p3367_p10  ;;  %s3263_s14 = smov 128  }
  0x11   : > { %s3264_s16 = smov 8   ;;  %s3265_s17 = smov [#allocation5]  }
  0x12   : > { %p3066_p12 = pnand %p3076_p9, %p3065_p11  ;;  %s279_s22 = sshll.u32 %s3265_s17, 4  ;;  %s280_s22 = int_to_ptr.vmem [resolvable:$true] %s279_s22 }
  0x13   : > { %327 = sbr.rel (%p3367_p10) target bundleno = 1165 (0x48d), region = 56 }
  0x14   : > { %3068 = dma.hbm_to_vmem [thread:$0]  (!%p3066_p12), %s261_s24, 512, %s263_s26, [#allocation3], %s3263_s14, %s3263_s14, %s3264_s16  }
  0x15   : > { %3071 = dma.hbm_to_vmem [thread:$0]  (!%p3066_p12), %s278_s29, 4096, %s280_s22, [#allocation6], %s3263_s14, %s3263_s14, %s3264_s16  }
  0x18   : > { %3235 = dma.done.wait (%p3076_p9), [#allocation3], 512  }
  0x19   : > { %3237 = vsyncadd (%p3076_p9), [#allocation3], 4294966784 }
  0x1a   : > { %3239 = dma.done.wait (%p3076_p9), [#allocation6], 4096  }
  0x1b   : > { %3241 = vsyncadd (%p3076_p9), [#allocation6], 4294963200  ;;  %vm517_vm0 = vcmask 1043456   ;;  %s2597_s23 = sshll.u32 %s3339_s13, 5  ;;  %vm518_vm1 = vcmask 1044480   ;;  %v3266_v0 = vmov 65535  }
  0x1c   : > { %p378_p13 = scmp.lt.s32.totalorder %s2597_s23, 37  ;;  %v519_v1 = vsel %vm517_vm0, 4294967295, %v3266_v0  ;;  %v2609_v3 = vld [vmem:[#allocation2 + $0x10] sm:$0xf]  ;;  %v2975_v4 = vld [vmem:[#allocation2 + $0x14] sm:$0x10] }
  0x1d   : > { %v520_v2 = vsel %vm518_vm1, %v519_v1, 0  ;;  %v2974_v5 = vld [vmem:[#allocation2 + $0x14] sm:$0xf]  ;;  %v2610_v6 = vor.u32 %v2975_v4, %v2609_v3  ;;  %v2611_v7 = vld [vmem:[#allocation2 + $0x18] sm:$0x10]  ;;  %vm468_vm2 = vcmask 203776  }
  0x1e   : > { %s4348_s23 = smov (!%p378_p13, %s2597_s23), 37  ;;  %v2614_v8 = vor.u32 %v2974_v5, %v2611_v7  ;;  %v2601_v9 = vld [vmem:[#allocation2] sm:$0xf]  ;;  %v2973_v10 = vld [vmem:[#allocation2 + $0x4] sm:$0xf0]  ;;  %s370_s14 = sand.u32 1, %s3252_s10  }
  0x1f   : > { %s2598_s21 = sshll.u32 %s4348_s23, 3  ;;  %v2972_v11 = vld [vmem:[#allocation2 + $0x4] sm:$0xf]  ;;  %v522_v12 = vand.u32 %v2610_v6, %v520_v2  ;;  %v2603_v13 = vld [vmem:[#allocation2 + $0x8] sm:$0xf0]  ;;  %v2602_v19 = vor.u32 %v2973_v10, %v2601_v9  ;;  %s2596_s16 = sshll.u32 %s370_s14, 1 }
  0x20   : > { %s3395_s26 = scalar_lea.vmem %s4323_s0, %s2598_s21  ;;  %v2990_v14 = vld [vmem:[#allocation5 + $0x74] sm:$0xf]  ;;  %v2707_v15 = vld [vmem:[#allocation5 + $0x78] sm:$0xf0]  ;;  %v525_v16 = vand.u32 %v2614_v8, %v520_v2  ;;  %v2606_v22 = vor.u32 %v2972_v11, %v2603_v13  ;;  %v2988_v26 = vld [vmem:[#allocation5 + $0x64] sm:$0xf] }
  0x21   : > { %v3006_v17 = vld [vmem:[#allocation5 + $0xf4] sm:$0xf]  ;;  %v2771_v18 = vld [vmem:[#allocation5 + $0xf8] sm:$0xf0]  ;;  %533 = vmatpush.bf16.msra.mxu0 %v522_v12  ;;  %v392_v20 = vld [vmem:[%s3395_s26] sm:$0xff]  ;;  %v2710_v23 = vor.u32 %v2990_v14, %v2707_v15  ;;  %vm2478_vm3 = vcmask 1040384  }
  0x22   : > { %v393_v21 = vld [vmem:[%s3395_s26 + $0x8] sm:$0xff]  ;;  %622 = vmatpush.bf16.msra.mxu1 %v525_v16  ;;  %v2774_v24 = vor.u32 %v3006_v17, %v2771_v18  ;;  %v3004_v28 = vld [vmem:[#allocation5 + $0xe4] sm:$0xf]  ;;  %v394_v32 = vld [vmem:[%s3395_s26 + $0x10] sm:$0xff]  ;;  %s372_s17 = scalar_lea.vmem [#allocation7], %s2596_s16  ;;  %s4268_s22 = scalar_lea.sflag [#allocation4], %s370_s14 }
  0x23   : > { %v424_v25 = vpack.c.bf16 %v393_v21, %v392_v20  ;;  %v2699_v27 = vld [vmem:[#allocation5 + $0x68] sm:$0xf0]  ;;  %v395_v33 = vld [vmem:[%s3395_s26 + $0x18] sm:$0xff]  ;;  %v396_v35 = vld [vmem:[%s3395_s26 + $0x20] sm:$0xff] }
  0x24   : > { %v2702_v29 = vor.u32 %v2988_v26, %v2699_v27  ;;  %v2763_v30 = vld [vmem:[#allocation5 + $0xe8] sm:$0xf0]  ;;  %v425_v34 = vpack.c.bf16 %v395_v33, %v394_v32  ;;  %v2986_v38 = vld [vmem:[#allocation5 + $0x54] sm:$0xf]  ;;  %v2691_v39 = vld [vmem:[#allocation5 + $0x58] sm:$0xf0] }
  0x25   : > { %534 = vmatpush.bf16.msra.mxu0 %v2602_v19  ;;  %v2766_v31 = vor.u32 %v3004_v28, %v2763_v30  ;;  %v397_v36 = vld [vmem:[%s3395_s26 + $0x28] sm:$0xff]  ;;  %v3002_v40 = vld [vmem:[#allocation5 + $0xd4] sm:$0xf]  ;;  %v2694_v41 = vor.u32 %v2986_v38, %v2691_v39  ;;  %v2755_v42 = vld [vmem:[#allocation5 + $0xd8] sm:$0xf0] }
  0x26   : > { %623 = vmatpush.bf16.msra.mxu1 %v2606_v22  ;;  %v426_v37 = vpack.c.bf16 %v397_v36, %v396_v35  ;;  %v2758_v43 = vor.u32 %v3002_v40, %v2755_v42  ;;  %v398_v44 = vld [vmem:[%s3395_s26 + $0x30] sm:$0xff]  ;;  %v399_v45 = vld [vmem:[%s3395_s26 + $0x38] sm:$0xff]  ;;  %v400_v47 = vld [vmem:[%s3395_s26 + $0x40] sm:$0xff] }
  0x27   : > { %v427_v46 = vpack.c.bf16 %v399_v45, %v398_v44  ;;  %v401_v48 = vld [vmem:[%s3395_s26 + $0x48] sm:$0xff]  ;;  %v2984_v50 = vld [vmem:[#allocation5 + $0x44] sm:$0xf]  ;;  %v2705_v55 = vld [vmem:[#allocation5 + $0x70] sm:$0xf] }
  0x28   : > { %2615 = vmatmul.msk.bf16.vlgmr.msra.gmra.mxu0 %vm468_vm2, %v424_v25  ;;  %v428_v49 = vpack.c.bf16 %v401_v48, %v400_v47  ;;  %v2683_v51 = vld [vmem:[#allocation5 + $0x48] sm:$0xf0]  ;;  %v3000_v52 = vld [vmem:[#allocation5 + $0xc4] sm:$0xf]  ;;  %v2991_v56 = vld [vmem:[#allocation5 + $0x74] sm:$0xf0] }
  0x29   : > { %1177 = vmatpush.bf16.msrb.mxu0 %v2710_v23  ;;  %2631 = vmatmul.msk.bf16.vlgmr.msra.gmra.mxu1 %vm468_vm2, %v424_v25  ;;  %v2686_v53 = vor.u32 %v2984_v50, %v2683_v51  ;;  %v2747_v54 = vld [vmem:[#allocation5 + $0xc8] sm:$0xf0]  ;;  %v2706_v58 = vor.u32 %v2991_v56, %v2705_v55  ;;  %v2769_v59 = vld [vmem:[#allocation5 + $0xf0] sm:$0xf]  ;;  %v3007_v60 = vld [vmem:[#allocation5 + $0xf4] sm:$0xf0] }
  0x2a   : > { %1266 = vmatpush.bf16.msrb.mxu1 %v2774_v24  ;;  %v2750_v57 = vor.u32 %v3000_v52, %v2747_v54  ;;  %v2770_v61 = vor.u32 %v3007_v60, %v2769_v59  ;;  %v402_v62 = vld [vmem:[%s3395_s26 + $0x50] sm:$0xff]  ;;  %v403_v63 = vld [vmem:[%s3395_s26 + $0x58] sm:$0xff]  ;;  %v2697_v1 = vld [vmem:[#allocation5 + $0x60] sm:$0xf] }
  0x2b   : > { %999 = vmatpush.bf16.msra.mxu2 %v2706_v58  ;;  %v429_v0 = vpack.c.bf16 %v403_v63, %v402_v62  ;;  %v2989_v2 = vld [vmem:[#allocation5 + $0x64] sm:$0xf0]  ;;  %v2761_v3 = vld [vmem:[#allocation5 + $0xe0] sm:$0xf]  ;;  %v2689_v7 = vld [vmem:[#allocation5 + $0x50] sm:$0xf] }
  0x2c   : > { %1088 = vmatpush.bf16.msra.mxu3 %v2770_v61  ;;  %v2698_v4 = vor.u32 %v2989_v2, %v2697_v1  ;;  %v3005_v5 = vld [vmem:[#allocation5 + $0xe4] sm:$0xf0]  ;;  %v2987_v8 = vld [vmem:[#allocation5 + $0x54] sm:$0xf0]  ;;  %v2753_v9 = vld [vmem:[#allocation5 + $0xd0] sm:$0xf] }
  0x2d   : > { %1178 = vmatpush.bf16.msrb.mxu0 %v2702_v29  ;;  %v2762_v6 = vor.u32 %v3005_v5, %v2761_v3  ;;  %v2690_v10 = vor.u32 %v2987_v8, %v2689_v7  ;;  %v3003_v11 = vld [vmem:[#allocation5 + $0xd4] sm:$0xf0]  ;;  %v2681_v13 = vld [vmem:[#allocation5 + $0x40] sm:$0xf]  ;;  %v2985_v14 = vld [vmem:[#allocation5 + $0x44] sm:$0xf0] }
  0x2e   : > { %1267 = vmatpush.bf16.msrb.mxu1 %v2766_v31  ;;  %v2754_v12 = vor.u32 %v3003_v11, %v2753_v9  ;;  %v2745_v15 = vld [vmem:[#allocation5 + $0xc0] sm:$0xf]  ;;  %v3001_v16 = vld [vmem:[#allocation5 + $0xc4] sm:$0xf0]  ;;  %v2682_v17 = vor.u32 %v2985_v14, %v2681_v13  ;;  %v2673_v21 = vld [vmem:[#allocation5 + $0x30] sm:$0xf] }
  0x2f   : > { %1000 = vmatpush.bf16.msra.mxu2 %v2698_v4  ;;  %v2746_v18 = vor.u32 %v3001_v16, %v2745_v15  ;;  %v404_v19 = vld [vmem:[%s3395_s26 + $0x60] sm:$0xff]  ;;  %v405_v20 = vld [vmem:[%s3395_s26 + $0x68] sm:$0xff]  ;;  %v2983_v22 = vld [vmem:[#allocation5 + $0x34] sm:$0xf0] }
  0x30   : > { %1089 = vmatpush.bf16.msra.mxu3 %v2762_v6  ;;  %v2737_v23 = vld [vmem:[#allocation5 + $0xb0] sm:$0xf]  ;;  %v430_v24 = vpack.c.bf16 %v405_v20, %v404_v19  ;;  %v2674_v25 = vor.u32 %v2983_v22, %v2673_v21  ;;  %v2999_v26 = vld [vmem:[#allocation5 + $0xb4] sm:$0xf0]  ;;  %v2665_v28 = vld [vmem:[#allocation5 + $0x20] sm:$0xf] }
  0x31   : > { %1179 = vmatpush.bf16.msrb.mxu0 %v2694_v41  ;;  %v2738_v27 = vor.u32 %v2999_v26, %v2737_v23  ;;  %v2981_v29 = vld [vmem:[#allocation5 + $0x24] sm:$0xf0]  ;;  %v2729_v31 = vld [vmem:[#allocation5 + $0xa0] sm:$0xf]  ;;  %v2982_v33 = vld [vmem:[#allocation5 + $0x34] sm:$0xf] }
  0x32   : > { %1268 = vmatpush.bf16.msrb.mxu1 %v2758_v43  ;;  %v2666_v30 = vor.u32 %v2981_v29, %v2665_v28  ;;  %v2997_v32 = vld [vmem:[#allocation5 + $0xa4] sm:$0xf0]  ;;  %v2998_v36 = vld [vmem:[#allocation5 + $0xb4] sm:$0xf]  ;;  %v2739_v38 = vld [vmem:[#allocation5 + $0xb8] sm:$0xf0] }
  0x33   : > { %1001 = vmatpush.bf16.msra.mxu2 %v2690_v10  ;;  %v2730_v35 = vor.u32 %v2997_v32, %v2729_v31  ;;  %v2742_v39 = vor.u32 %v2998_v36, %v2739_v38  ;;  %v2657_v40 = vld [vmem:[#allocation5 + $0x10] sm:$0xf]  ;;  %v2979_v41 = vld [vmem:[#allocation5 + $0x14] sm:$0xf0]  ;;  %v2977_v47 = vld [vmem:[#allocation5 + $0x4] sm:$0xf0] }
  0x34   : > { %1090 = vmatpush.bf16.msra.mxu3 %v2754_v12  ;;  %v2721_v42 = vld [vmem:[#allocation5 + $0x90] sm:$0xf]  ;;  %v2658_v43 = vor.u32 %v2979_v41, %v2657_v40  ;;  %v2995_v44 = vld [vmem:[#allocation5 + $0x94] sm:$0xf0]  ;;  %v2713_v48 = vld [vmem:[#allocation5 + $0x80] sm:$0xf] }
  0x35   : > { %1180 = vmatpush.bf16.msrb.mxu0 %v2686_v53  ;;  %v2722_v45 = vor.u32 %v2995_v44, %v2721_v42  ;;  %v2993_v50 = vld [vmem:[#allocation5 + $0x84] sm:$0xf0]  ;;  %v406_v51 = vld [vmem:[%s3395_s26 + $0x70] sm:$0xff]  ;;  %v407_v52 = vld [vmem:[%s3395_s26 + $0x78] sm:$0xff] }
  0x36   : > { %1269 = vmatpush.bf16.msrb.mxu1 %v2750_v57  ;;  %v2714_v53 = vor.u32 %v2993_v50, %v2713_v48  ;;  %v431_v54 = vpack.c.bf16 %v407_v52, %v406_v51  ;;  %v2833_v55 = vld [vmem:[%s4328_s5 + $0x70] sm:$0xf]  ;;  %v3023_v56 = vld [vmem:[%s4328_s5 + $0x74] sm:$0xf0]  ;;  %v408_v61 = vld [vmem:[%s3395_s26 + $0x80] sm:$0xff] }
  0x37   : > { %1002 = vmatpush.bf16.msra.mxu2 %v2682_v17  ;;  %v2834_v57 = vor.u32 %v3023_v56, %v2833_v55  ;;  %v2897_v58 = vld [vmem:[%s4328_s5 + $0xf0] sm:$0xf]  ;;  %v3039_v59 = vld [vmem:[%s4328_s5 + $0xf4] sm:$0xf0]  ;;  %v409_v62 = vld [vmem:[%s3395_s26 + $0x88] sm:$0xff] }
  0x38   : > { %2616 = vmatmul.msk.bf16.gmra.mxu0 %vm468_vm2, %v425_v34  ;;  %1091 = vmatpush.bf16.msra.mxu3 %v2746_v18  ;;  %v2898_v60 = vor.u32 %v3039_v59, %v2897_v58  ;;  %v432_v63 = vpack.c.bf16 %v409_v62, %v408_v61  ;;  %v2980_v5 = vld [vmem:[#allocation5 + $0x24] sm:$0xf]  ;;  %v2667_v6 = vld [vmem:[#allocation5 + $0x28] sm:$0xf0]  ;;  %v410_v21 = vld [vmem:[%s3395_s26 + $0x90] sm:$0xff] }
  0x39   : > { %2632 = vmatmul.msk.bf16.gmra.mxu1 %vm468_vm2, %v425_v34  ;;  %v2675_v34 = vld [vmem:[#allocation5 + $0x38] sm:$0xf0]  ;;  %v2670_v7 = vor.u32 %v2980_v5, %v2667_v6  ;;  %v2996_v8 = vld [vmem:[#allocation5 + $0xa4] sm:$0xf]  ;;  %v2731_v9 = vld [vmem:[#allocation5 + $0xa8] sm:$0xf0] }
  0x3a   : > { %1270 = vmatpush.bf16.msrb.mxu1 %v2742_v39  ;;  %v2734_v10 = vor.u32 %v2996_v8, %v2731_v9  ;;  %v411_v22 = vld [vmem:[%s3395_s26 + $0x98] sm:$0xff]  ;;  %v3021_v28 = vld [vmem:[%s4328_s5 + $0x64] sm:$0xf0]  ;;  %v2889_v31 = vld [vmem:[%s4328_s5 + $0xe0] sm:$0xf] }
  0x3b   : > { %1003 = vmatpush.bf16.msra.mxu2 %v2674_v25  ;;  %v433_v25 = vpack.c.bf16 %v411_v22, %v410_v21  ;;  %v3037_v32 = vld [vmem:[%s4328_s5 + $0xe4] sm:$0xf0]  ;;  %v412_v44 = vld [vmem:[%s3395_s26 + $0xa0] sm:$0xff]  ;;  %v2978_v51 = vld [vmem:[#allocation5 + $0x14] sm:$0xf] }
  0x3c   : > { %1092 = vmatpush.bf16.msra.mxu3 %v2738_v27  ;;  %v2825_v27 = vld [vmem:[%s4328_s5 + $0x60] sm:$0xf]  ;;  %v2659_v52 = vld [vmem:[#allocation5 + $0x18] sm:$0xf0]  ;;  %v414_v5 = vld [vmem:[%s3395_s26 + $0xb0] sm:$0xff] }
  0x3d   : > { %v2723_v55 = vld [vmem:[#allocation5 + $0x98] sm:$0xf0] }
  0x3e   : > { %1271 = vmatpush.bf16.msrb.mxu1 %v2734_v10  ;;  %v415_v6 = vld [vmem:[%s3395_s26 + $0xb8] sm:$0xff] }
  0x3f   : > { %1004 = vmatpush.bf16.msra.mxu2 %v2666_v30  ;;  %v2826_v30 = vor.u32 %v3021_v28, %v2825_v27  ;;  %v435_v9 = vpack.c.bf16 %v415_v6, %v414_v5 }
  0x40   : > { %1093 = vmatpush.bf16.msra.mxu3 %v2730_v35 }
  0x43   : > { %1005 = vmatpush.bf16.msra.mxu2 %v2658_v43 }
  0x44   : > { %1094 = vmatpush.bf16.msra.mxu3 %v2722_v45  ;;  %v413_v45 = vld [vmem:[%s3395_s26 + $0xa8] sm:$0xff] }
  0x45   : > { %v434_v48 = vpack.c.bf16 %v413_v45, %v412_v44 }
  0x48   : > { %2617 = vmatmul.msk.bf16.gmra.mxu0 %vm468_vm2, %v426_v37  ;;  %1095 = vmatpush.bf16.msra.mxu3 %v2714_v53  ;;  %v2662_v53 = vor.u32 %v2978_v51, %v2659_v52 }
  0x49   : > { %2633 = vmatmul.msk.bf16.gmra.mxu1 %vm468_vm2, %v426_v37  ;;  %v2678_v37 = vor.u32 %v2982_v33, %v2675_v34  ;;  %v2890_v33 = vor.u32 %v3037_v32, %v2889_v31  ;;  %v417_v31 = vld [vmem:[%s3395_s26 + $0xc8] sm:$0xff] }
  0x4b   : > { %1181 = vmatpush.bf16.msrb.mxu0 %v2678_v37 }
  0x4c   : > { %1738 = vmatpush.bf16.msrb.mxu3 %v2898_v60 }
  0x4f   : > { %1182 = vmatpush.bf16.msrb.mxu0 %v2670_v7 }
  0x50   : > { %1739 = vmatpush.bf16.msrb.mxu3 %v2890_v33 }
  0x53   : > { %1183 = vmatpush.bf16.msrb.mxu0 %v2662_v53 }
  0x58   : > { %2618 = vmatmul.msk.bf16.gmra.mxu0 %vm468_vm2, %v427_v46 }
  0x59   : > { %2634 = vmatmul.msk.bf16.gmra.mxu1 %vm468_vm2, %v427_v46  ;;  %v2649_v46 = vld [vmem:[#allocation5] sm:$0xf] }
  0x68   : > { %2619 = vmatmul.msk.bf16.gmra.mxu0 %vm468_vm2, %v428_v49 }
  0x69   : > { %2635 = vmatmul.msk.bf16.gmra.mxu1 %vm468_vm2, %v428_v49  ;;  %v2650_v49 = vor.u32 %v2977_v47, %v2649_v46 }
  0x6b   : > { %1006 = vmatpush.bf16.msra.mxu2 %v2650_v49 }
  0x6f   : > { %1649 = vmatpush.bf16.msrb.mxu2 %v2834_v57 }
  0x73   : > { %1650 = vmatpush.bf16.msrb.mxu2 %v2826_v30  ;;  %v416_v30 = vld [vmem:[%s3395_s26 + $0xc0] sm:$0xff] }
  0x78   : > { %2620 = vmatmul.msk.bf16.gmra.mxu0 %vm468_vm2, %v429_v0 }
  0x79   : > { %2636 = vmatmul.msk.bf16.gmra.mxu1 %vm468_vm2, %v429_v0  ;;  %v444_v0 = vld [vmem:[%s4325_s2] sm:$0x3] }
  0x7a   : > { %v3446_v3 = vperm.slane %v444_v0, 0  ;;  %v3449_v4 = vperm.slane %v444_v0, 1 }
  0x88   : > { %2621 = vmatmul.msk.bf16.gmra.mxu0 %vm468_vm2, %v430_v24 }
  0x89   : > { %2637 = vmatmul.msk.bf16.gmra.mxu1 %vm468_vm2, %v430_v24 }
  0x98   : > { %2622 = vmatmul.msk.bf16.gmra.mxu0 %vm468_vm2, %v431_v54 }
  0x99   : > { %2638 = vmatmul.msk.bf16.gmra.mxu1 %vm468_vm2, %v431_v54  ;;  %v2994_v54 = vld [vmem:[#allocation5 + $0x94] sm:$0xf] }
  0x9a   : > { %v2726_v56 = vor.u32 %v2994_v54, %v2723_v55  ;;  %v418_v55 = vld [vmem:[%s3395_s26 + $0xd0] sm:$0xff] }
  0x9c   : > { %1272 = vmatpush.bf16.msrb.mxu1 %v2726_v56  ;;  %v419_v56 = vld [vmem:[%s3395_s26 + $0xd8] sm:$0xff] }
  0xa5   : > { %v536_v1 = vpop.f32.mrf.mxu0 }
  0xa6   : > { %v625_v2 = vpop.f32.mrf.mxu1  ;;  %v537_v11 = vadd.f32 %v536_v1, %v3446_v3 }
  0xa7   : > { %v626_v12 = vadd.f32 %v625_v2, %v3449_v4 }
  0xa8   : > { %2623 = vmatmul.msk.bf16.gmra.mxu0 %vm468_vm2, %v432_v63  ;;  %v705_v17 = vmax.f32 %v537_v11, 0.0  ;;  %v2817_v11 = vld [vmem:[%s4328_s5 + $0x50] sm:$0xf] }
  0xa9   : > { %2639 = vmatmul.msk.bf16.gmra.mxu1 %vm468_vm2, %v432_v63  ;;  %v706_v19 = vmax.f32 %v626_v12, 0.0  ;;  %v3019_v12 = vld [vmem:[%s4328_s5 + $0x54] sm:$0xf0] }
  0xad   : > { %v538_v13 = vpop.f32.mrf.mxu0 }
  0xae   : > { %v539_v14 = vadd.f32 %v538_v13, %v3446_v3  ;;  %v627_v15 = vpop.f32.mrf.mxu1 }
  0xaf   : > { %v628_v16 = vadd.f32 %v627_v15, %v3449_v4  ;;  %v2881_v15 = vld [vmem:[%s4328_s5 + $0xd0] sm:$0xf] }
  0xb0   : > { %v707_v18 = vmax.f32 %v539_v14, 0.0  ;;  %v2818_v14 = vor.u32 %v3019_v12, %v2817_v11 }
  0xb1   : > { %v708_v20 = vmax.f32 %v628_v16, 0.0  ;;  %v3035_v16 = vld [vmem:[%s4328_s5 + $0xd4] sm:$0xf0] }
  0xb2   : > { %v3458_v23 = vpack.c.bf16 %v707_v18, %v705_v17  ;;  %1651 = vmatpush.bf16.msrb.mxu2 %v2818_v14  ;;  %v2882_v17 = vor.u32 %v3035_v16, %v2881_v15 }
  0xb3   : > { %v3460_v24 = vpack.c.bf16 %v708_v20, %v706_v19 }
  0xb4   : > { %1007 = vmatmul.bf16.vlgmr.msra.gmra.mxu2 %v3458_v23  ;;  %1740 = vmatpush.bf16.msrb.mxu3 %v2882_v17 }
  0xb5   : > { %1096 = vmatmul.bf16.vlgmr.msra.gmra.mxu3 %v3460_v24  ;;  %v541_v26 = vpop.f32.mrf.mxu0 }
  0xb6   : > { %v630_v29 = vpop.f32.mrf.mxu1  ;;  %v542_v34 = vadd.f32 %v541_v26, %v3446_v3 }
  0xb7   : > { %v631_v35 = vadd.f32 %v630_v29, %v3449_v4 }
  0xb8   : > { %2624 = vmatmul.msk.bf16.gmra.mxu0 %vm468_vm2, %v433_v25  ;;  %v709_v40 = vmax.f32 %v542_v34, 0.0  ;;  %v436_v34 = vpack.c.bf16 %v417_v31, %v416_v30  ;;  %v3038_v30 = vld [vmem:[%s4328_s5 + $0xf4] sm:$0xf]  ;;  %v2899_v31 = vld [vmem:[%s4328_s5 + $0xf8] sm:$0xf0] }
  0xb9   : > { %2640 = vmatmul.msk.bf16.gmra.mxu1 %vm468_vm2, %v433_v25  ;;  %v710_v42 = vmax.f32 %v631_v35, 0.0 }
  0xbd   : > { %v543_v36 = vpop.f32.mrf.mxu0 }
  0xbe   : > { %v544_v37 = vadd.f32 %v543_v36, %v3446_v3  ;;  %v632_v38 = vpop.f32.mrf.mxu1 }
  0xbf   : > { %v633_v39 = vadd.f32 %v632_v38, %v3449_v4  ;;  %v2651_v38 = vld [vmem:[#allocation5 + $0x8] sm:$0xf0] }
  0xc0   : > { %v711_v41 = vmax.f32 %v544_v37, 0.0  ;;  %v2976_v37 = vld [vmem:[#allocation5 + $0x4] sm:$0xf] }
  0xc1   : > { %v712_v43 = vmax.f32 %v633_v39, 0.0  ;;  %v2654_v39 = vor.u32 %v2976_v37, %v2651_v38 }
  0xc2   : > { %v3484_v46 = vpack.c.bf16 %v711_v41, %v709_v40  ;;  %v2992_v40 = vld [vmem:[#allocation5 + $0x84] sm:$0xf]  ;;  %v2715_v41 = vld [vmem:[#allocation5 + $0x88] sm:$0xf0] }
  0xc3   : > { %v3486_v47 = vpack.c.bf16 %v712_v43, %v710_v42  ;;  %v2718_v42 = vor.u32 %v2992_v40, %v2715_v41  ;;  %1184 = vmatpush.bf16.msrb.mxu0 %v2654_v39 }
  0xc4   : > { %1012 = vmatmul.bf16.gmra.mxu2 %v3484_v46 }
  0xc5   : > { %1101 = vmatmul.bf16.gmra.mxu3 %v3486_v47  ;;  %v546_v49 = vpop.f32.mrf.mxu0  ;;  %1273 = vmatpush.bf16.msrb.mxu1 %v2718_v42 }
  0xc6   : > { %v635_v50 = vpop.f32.mrf.mxu1  ;;  %v547_v57 = vadd.f32 %v546_v49, %v3446_v3 }
  0xc7   : > { %v636_v58 = vadd.f32 %v635_v50, %v3449_v4 }
  0xc8   : > { %2625 = vmatmul.msk.bf16.gmra.mxu0 %vm468_vm2, %v434_v48  ;;  %v713_v63 = vmax.f32 %v547_v57, 0.0 }
  0xc9   : > { %2641 = vmatmul.msk.bf16.gmra.mxu1 %vm468_vm2, %v434_v48  ;;  %v714_v1 = vmax.f32 %v636_v58, 0.0 }
  0xcd   : > { %v548_v59 = vpop.f32.mrf.mxu0 }
  0xce   : > { %v549_v60 = vadd.f32 %v548_v59, %v3446_v3  ;;  %v637_v61 = vpop.f32.mrf.mxu1  ;;  %v437_v59 = vpack.c.bf16 %v419_v56, %v418_v55 }
  0xcf   : > { %v638_v62 = vadd.f32 %v637_v61, %v3449_v4  ;;  %v2809_v61 = vld [vmem:[%s4328_s5 + $0x40] sm:$0xf] }
  0xd0   : > { %v715_v0 = vmax.f32 %v549_v60, 0.0 }
  0xd1   : > { %v716_v2 = vmax.f32 %v638_v62, 0.0  ;;  %v3017_v62 = vld [vmem:[%s4328_s5 + $0x44] sm:$0xf0] }
  0xd2   : > { %v3498_v7 = vpack.c.bf16 %v715_v0, %v713_v63  ;;  %v2810_v0 = vor.u32 %v3017_v62, %v2809_v61 }
  0xd3   : > { %v3500_v8 = vpack.c.bf16 %v716_v2, %v714_v1  ;;  %v2873_v1 = vld [vmem:[%s4328_s5 + $0xc0] sm:$0xf]  ;;  %v3033_v2 = vld [vmem:[%s4328_s5 + $0xc4] sm:$0xf0] }
  0xd4   : > { %1017 = vmatmul.bf16.gmra.mxu2 %v3498_v7  ;;  %v2874_v5 = vor.u32 %v3033_v2, %v2873_v1 }
  0xd5   : > { %1106 = vmatmul.bf16.gmra.mxu3 %v3500_v8  ;;  %v551_v10 = vpop.f32.mrf.mxu0  ;;  %1652 = vmatpush.bf16.msrb.mxu2 %v2810_v0 }
  0xd6   : > { %v640_v13 = vpop.f32.mrf.mxu1  ;;  %v552_v18 = vadd.f32 %v551_v10, %v3446_v3  ;;  %1741 = vmatpush.bf16.msrb.mxu3 %v2874_v5 }
  0xd7   : > { %v641_v19 = vadd.f32 %v640_v13, %v3449_v4 }
  0xd8   : > { %2626 = vmatmul.msk.bf16.gmra.mxu0 %vm468_vm2, %v435_v9  ;;  %v717_v26 = vmax.f32 %v552_v18, 0.0  ;;  %v420_v18 = vld [vmem:[%s3395_s26 + $0xe0] sm:$0xff] }
  0xd9   : > { %2642 = vmatmul.msk.bf16.gmra.mxu1 %vm468_vm2, %v435_v9  ;;  %v718_v28 = vmax.f32 %v641_v19, 0.0  ;;  %v421_v19 = vld [vmem:[%s3395_s26 + $0xe8] sm:$0xff] }
  0xdd   : > { %v553_v20 = vpop.f32.mrf.mxu0 }
  0xde   : > { %v554_v21 = vadd.f32 %v553_v20, %v3446_v3  ;;  %v642_v22 = vpop.f32.mrf.mxu1 }
  0xdf   : > { %v643_v25 = vadd.f32 %v642_v22, %v3449_v4  ;;  %v438_v22 = vpack.c.bf16 %v421_v19, %v420_v18  ;;  %v2827_v18 = vld [vmem:[%s4328_s5 + $0x68] sm:$0xf0]  ;;  %v3036_v19 = vld [vmem:[%s4328_s5 + $0xe4] sm:$0xf] }
  0xe0   : > { %v719_v27 = vmax.f32 %v554_v21, 0.0 }
  0xe1   : > { %v720_v29 = vmax.f32 %v643_v25, 0.0 }
  0xe2   : > { %v3524_v32 = vpack.c.bf16 %v719_v27, %v717_v26  ;;  %v3022_v27 = vld [vmem:[%s4328_s5 + $0x74] sm:$0xf] }
  0xe3   : > { %v3526_v33 = vpack.c.bf16 %v720_v29, %v718_v28  ;;  %v2835_v28 = vld [vmem:[%s4328_s5 + $0x78] sm:$0xf0] }
  0xe4   : > { %1022 = vmatmul.bf16.gmra.mxu2 %v3524_v32  ;;  %v2838_v29 = vor.u32 %v3022_v27, %v2835_v28 }
  0xe5   : > { %1111 = vmatmul.bf16.gmra.mxu3 %v3526_v33  ;;  %v556_v35 = vpop.f32.mrf.mxu0 }
  0xe6   : > { %v645_v36 = vpop.f32.mrf.mxu1  ;;  %v557_v43 = vadd.f32 %v556_v35, %v3446_v3  ;;  %1827 = vmatpush.bf16.msra.mxu0 %v2838_v29 }
  0xe7   : > { %v646_v44 = vadd.f32 %v645_v36, %v3449_v4 }
  0xe8   : > { %2627 = vmatmul.msk.bf16.gmra.mxu0 %vm468_vm2, %v436_v34  ;;  %v721_v51 = vmax.f32 %v557_v43, 0.0 }
  0xe9   : > { %2643 = vmatmul.msk.bf16.gmra.mxu1 %vm468_vm2, %v436_v34  ;;  %v722_v53 = vmax.f32 %v646_v44, 0.0  ;;  %v2902_v34 = vor.u32 %v3038_v30, %v2899_v31 }
  0xeb   : > { %1916 = vmatpush.bf16.msra.mxu1 %v2902_v34 }
  0xed   : > { %v558_v45 = vpop.f32.mrf.mxu0 }
  0xee   : > { %v559_v48 = vadd.f32 %v558_v45, %v3446_v3  ;;  %v647_v49 = vpop.f32.mrf.mxu1  ;;  %v422_v45 = vld [vmem:[%s3395_s26 + $0xf0] sm:$0xff] }
  0xef   : > { %v648_v50 = vadd.f32 %v647_v49, %v3449_v4 }
  0xf0   : > { %v723_v52 = vmax.f32 %v559_v48, 0.0  ;;  %v423_v48 = vld [vmem:[%s3395_s26 + $0xf8] sm:$0xff] }
  0xf1   : > { %v724_v54 = vmax.f32 %v648_v50, 0.0 }
  0xf2   : > { %v3538_v57 = vpack.c.bf16 %v723_v52, %v721_v51  ;;  %v439_v51 = vpack.c.bf16 %v423_v48, %v422_v45 }
  0xf3   : > { %v3540_v58 = vpack.c.bf16 %v724_v54, %v722_v53  ;;  %v2801_v53 = vld [vmem:[%s4328_s5 + $0x30] sm:$0xf]  ;;  %v3015_v54 = vld [vmem:[%s4328_s5 + $0x34] sm:$0xf0] }
  0xf4   : > { %1027 = vmatmul.bf16.gmra.mxu2 %v3538_v57  ;;  %v2802_v56 = vor.u32 %v3015_v54, %v2801_v53  ;;  %v3029_v53 = vld [vmem:[%s4328_s5 + $0xa4] sm:$0xf0] }
  0xf5   : > { %1116 = vmatmul.bf16.gmra.mxu3 %v3540_v58  ;;  %v561_v60 = vpop.f32.mrf.mxu0 }
  0xf6   : > { %v650_v63 = vpop.f32.mrf.mxu1  ;;  %v562_v6 = vadd.f32 %v561_v60, %v3446_v3  ;;  %1653 = vmatpush.bf16.msrb.mxu2 %v2802_v56  ;;  %v3031_v60 = vld [vmem:[%s4328_s5 + $0xb4] sm:$0xf0] }
  0xf7   : > { %v651_v9 = vadd.f32 %v650_v63, %v3449_v4 }
  0xf8   : > { %2628 = vmatmul.msk.bf16.gmra.mxu0 %vm468_vm2, %v437_v59  ;;  %v725_v14 = vmax.f32 %v562_v6, 0.0 }
  0xf9   : > { %2644 = vmatmul.msk.bf16.gmra.mxu1 %vm468_vm2, %v437_v59  ;;  %v726_v16 = vmax.f32 %v651_v9, 0.0  ;;  %v2865_v59 = vld [vmem:[%s4328_s5 + $0xb0] sm:$0xf] }
  0xfa   : > { %v2866_v61 = vor.u32 %v3031_v60, %v2865_v59 }
  0xfc   : > { %1742 = vmatpush.bf16.msrb.mxu3 %v2866_v61 }
  0xfd   : > { %v563_v10 = vpop.f32.mrf.mxu0 }
  0xfe   : > { %v564_v11 = vadd.f32 %v563_v10, %v3446_v3  ;;  %v652_v12 = vpop.f32.mrf.mxu1 }
  0xff   : > { %v653_v13 = vadd.f32 %v652_v12, %v3449_v4 }
 0x100   : > { %v727_v15 = vmax.f32 %v564_v11, 0.0 }
 0x101   : > { %v728_v17 = vmax.f32 %v653_v13, 0.0 }
 0x102   : > { %v3564_v20 = vpack.c.bf16 %v727_v15, %v725_v14 }
 0x103   : > { %v3566_v21 = vpack.c.bf16 %v728_v17, %v726_v16  ;;  %v3020_v17 = vld [vmem:[%s4328_s5 + $0x64] sm:$0xf] }
 0x104   : > { %1032 = vmatmul.bf16.gmra.mxu2 %v3564_v20 }
 0x105   : > { %1121 = vmatmul.bf16.gmra.mxu3 %v3566_v21  ;;  %v566_v25 = vpop.f32.mrf.mxu0 }
 0x106   : > { %v655_v26 = vpop.f32.mrf.mxu1  ;;  %v567_v35 = vadd.f32 %v566_v25, %v3446_v3 }
 0x107   : > { %v656_v36 = vadd.f32 %v655_v26, %v3449_v4 }
 0x108   : > { %2629 = vmatmul.msk.bf16.gmra.mxu0 %vm468_vm2, %v438_v22  ;;  %v729_v41 = vmax.f32 %v567_v35, 0.0 }
 0x109   : > { %2645 = vmatmul.msk.bf16.gmra.mxu1 %vm468_vm2, %v438_v22  ;;  %v730_v43 = vmax.f32 %v656_v36, 0.0  ;;  %v3641_v36 = vld [vmem:[%s4327_s4] sm:$0x3] }
 0x10d   : > { %v568_v37 = vpop.f32.mrf.mxu0 }
 0x10e   : > { %v569_v38 = vadd.f32 %v568_v37, %v3446_v3  ;;  %v657_v39 = vpop.f32.mrf.mxu1 }
 0x10f   : > { %v658_v40 = vadd.f32 %v657_v39, %v3449_v4  ;;  %v3649_v39 = vperm.slane %v3641_v36, 0 }
 0x110   : > { %v731_v42 = vmax.f32 %v569_v38, 0.0 }
 0x111   : > { %v732_v44 = vmax.f32 %v658_v40, 0.0 }
 0x112   : > { %v3590_v49 = vpack.c.bf16 %v731_v42, %v729_v41  ;;  %v2793_v41 = vld [vmem:[%s4328_s5 + $0x20] sm:$0xf]  ;;  %v3013_v42 = vld [vmem:[%s4328_s5 + $0x24] sm:$0xf0] }
 0x113   : > { %v3592_v50 = vpack.c.bf16 %v732_v44, %v730_v43  ;;  %v2794_v44 = vor.u32 %v3013_v42, %v2793_v41 }
 0x114   : > { %1037 = vmatmul.bf16.gmra.mxu2 %v3590_v49 }
 0x115   : > { %1126 = vmatmul.bf16.gmra.mxu3 %v3592_v50  ;;  %v571_v52 = vpop.f32.mrf.mxu0  ;;  %1654 = vmatpush.bf16.msrb.mxu2 %v2794_v44 }
 0x116   : > { %v660_v55 = vpop.f32.mrf.mxu1  ;;  %v572_v62 = vadd.f32 %v571_v52, %v3446_v3  ;;  %v2857_v52 = vld [vmem:[%s4328_s5 + $0xa0] sm:$0xf] }
 0x117   : > { %v661_v63 = vadd.f32 %v660_v55, %v3449_v4  ;;  %v2858_v55 = vor.u32 %v3029_v53, %v2857_v52 }
 0x118   : > { %2630 = vmatmul.msk.bf16.gmra.mxu0 %vm468_vm2, %v439_v51  ;;  %v733_v6 = vmax.f32 %v572_v62, 0.0 }
 0x119   : > { %2646 = vmatmul.msk.bf16.gmra.mxu1 %vm468_vm2, %v439_v51  ;;  %v734_v10 = vmax.f32 %v661_v63, 0.0  ;;  %1743 = vmatpush.bf16.msrb.mxu3 %v2858_v55 }
 0x11d   : > { %v573_v0 = vpop.f32.mrf.mxu0 }
 0x11e   : > { %v574_v1 = vadd.f32 %v573_v0, %v3446_v3  ;;  %v662_v2 = vpop.f32.mrf.mxu1 }
 0x11f   : > { %v663_v5 = vadd.f32 %v662_v2, %v3449_v4 }
 0x120   : > { %v735_v9 = vmax.f32 %v574_v1, 0.0 }
 0x121   : > { %v736_v11 = vmax.f32 %v663_v5, 0.0 }
 0x122   : > { %v3614_v12 = vpack.c.bf16 %v735_v9, %v733_v6 }
 0x123   : > { %v3616_v13 = vpack.c.bf16 %v736_v11, %v734_v10 }
 0x124   : > { %1042 = vmatmul.bf16.gmra.mxu2 %v3614_v12 }
 0x125   : > { %1131 = vmatmul.bf16.gmra.mxu3 %v3616_v13  ;;  %v576_v14 = vpop.f32.mrf.mxu0 }
 0x126   : > { %v665_v15 = vpop.f32.mrf.mxu1  ;;  %v577_v16 = vadd.f32 %v576_v14, %v3446_v3 }
 0x127   : > { %v666_v22 = vadd.f32 %v665_v15, %v3449_v4 }
 0x128   : > { %1185 = vmatmul.bf16.vlgmr.msrb.gmra.mxu0 %v3458_v23  ;;  %v2830_v23 = vor.u32 %v3020_v17, %v2827_v18  ;;  %v737_v30 = vmax.f32 %v577_v16, 0.0 }
 0x129   : > { %1274 = vmatmul.bf16.vlgmr.msrb.gmra.mxu1 %v3460_v24  ;;  %v2891_v24 = vld [vmem:[%s4328_s5 + $0xe8] sm:$0xf0]  ;;  %v738_v34 = vmax.f32 %v666_v22, 0.0 }
 0x12a   : > { %v2894_v28 = vor.u32 %v3036_v19, %v2891_v24  ;;  %1828 = vmatpush.bf16.msra.mxu0 %v2830_v23 }
 0x12c   : > { %1917 = vmatpush.bf16.msra.mxu1 %v2894_v28 }
 0x12d   : > { %v578_v25 = vpop.f32.mrf.mxu0 }
 0x12e   : > { %v579_v26 = vadd.f32 %v578_v25, %v3446_v3  ;;  %v667_v27 = vpop.f32.mrf.mxu1 }
 0x12f   : > { %v668_v29 = vadd.f32 %v667_v27, %v3449_v4  ;;  %v2819_v27 = vld [vmem:[%s4328_s5 + $0x58] sm:$0xf0] }
 0x130   : > { %v739_v31 = vmax.f32 %v579_v26, 0.0  ;;  %v3018_v26 = vld [vmem:[%s4328_s5 + $0x54] sm:$0xf] }
 0x131   : > { %v740_v35 = vmax.f32 %v668_v29, 0.0 }
 0x132   : > { %v3643_v37 = vpack.c.bf16 %v739_v31, %v737_v30  ;;  %v2822_v30 = vor.u32 %v3018_v26, %v2819_v27 }
 0x133   : > { %v3645_v38 = vpack.c.bf16 %v740_v35, %v738_v34 }
 0x134   : > { %1047 = vmatmul.bf16.gmra.mxu2 %v3643_v37  ;;  %1829 = vmatpush.bf16.msra.mxu0 %v2822_v30 }
 0x135   : > { %1136 = vmatmul.bf16.gmra.mxu3 %v3645_v38  ;;  %v581_v40 = vpop.f32.mrf.mxu0 }
 0x136   : > { %v670_v43 = vpop.f32.mrf.mxu1  ;;  %v582_v56 = vadd.f32 %v581_v40, %v3446_v3 }
 0x137   : > { %v1008_v45 = vpop.f32.mrf.mxu2  ;;  %v671_v59 = vadd.f32 %v670_v43, %v3449_v4 }
 0x138   : > { %v1009_v48 = vadd.f32 %v1008_v45, %v3649_v39  ;;  %v1097_v51 = vpop.f32.mrf.mxu3  ;;  %1190 = vmatmul.bf16.gmra.mxu0 %v3484_v46  ;;  %v741_v63 = vmax.f32 %v582_v56, 0.0 }
 0x139   : > { %1279 = vmatmul.bf16.gmra.mxu1 %v3486_v47  ;;  %v742_v5 = vmax.f32 %v671_v59, 0.0 }
 0x13a   : > { %v1098_v54 = vadd.f32 %v1097_v51, %v1009_v48 }
 0x13c   : > { %v1355_v14 = vmax.f32 %v1098_v54, 0.0 }
 0x13d   : > { %v583_v60 = vpop.f32.mrf.mxu0 }
 0x13e   : > { %v584_v46 = vadd.f32 %v583_v60, %v3446_v3  ;;  %v672_v61 = vpop.f32.mrf.mxu1  ;;  %v2785_v60 = vld [vmem:[%s4328_s5 + $0x10] sm:$0xf] }
 0x13f   : > { %v673_v47 = vadd.f32 %v672_v61, %v3449_v4  ;;  %v1010_v62 = vpop.f32.mrf.mxu2 }
 0x140   : > { %v743_v0 = vmax.f32 %v584_v46, 0.0  ;;  %v1011_v1 = vadd.f32 %v1010_v62, %v3649_v39  ;;  %v1099_v2 = vpop.f32.mrf.mxu3  ;;  %v3011_v46 = vld [vmem:[%s4328_s5 + $0x14] sm:$0xf0] }
 0x141   : > { %v744_v6 = vmax.f32 %v673_v47, 0.0  ;;  %v2786_v47 = vor.u32 %v3011_v46, %v2785_v60 }
 0x142   : > { %v1100_v9 = vadd.f32 %v1099_v2, %v1011_v1  ;;  %v3672_v10 = vpack.c.bf16 %v743_v0, %v741_v63  ;;  %v2849_v2 = vld [vmem:[%s4328_s5 + $0x90] sm:$0xf] }
 0x143   : > { %v3674_v11 = vpack.c.bf16 %v744_v6, %v742_v5  ;;  %1655 = vmatpush.bf16.msrb.mxu2 %v2786_v47  ;;  %v3027_v5 = vld [vmem:[%s4328_s5 + $0x94] sm:$0xf0] }
 0x144   : > { %v1357_v15 = vmax.f32 %v1100_v9, 0.0  ;;  %1052 = vmatmul.bf16.gmra.mxu2 %v3672_v10  ;;  %v2850_v9 = vor.u32 %v3027_v5, %v2849_v2 }
 0x145   : > { %1141 = vmatmul.bf16.gmra.mxu3 %v3674_v11  ;;  %v586_v16 = vpop.f32.mrf.mxu0 }
 0x146   : > { %v3678_v17 = vpack.c.bf16 %v1357_v15, %v1355_v14  ;;  %v675_v18 = vpop.f32.mrf.mxu1  ;;  %v587_v24 = vadd.f32 %v586_v16, %v3446_v3  ;;  %1744 = vmatpush.bf16.msrb.mxu3 %v2850_v9 }
 0x147   : > { %v1013_v19 = vpop.f32.mrf.mxu2  ;;  %v676_v28 = vadd.f32 %v675_v18, %v3449_v4 }
 0x148   : > { %v1014_v22 = vadd.f32 %v1013_v19, %v3649_v39  ;;  %v1102_v25 = vpop.f32.mrf.mxu3  ;;  %1195 = vmatmul.bf16.gmra.mxu0 %v3498_v7  ;;  %v3034_v7 = vld [vmem:[%s4328_s5 + $0xd4] sm:$0xf]  ;;  %v745_v42 = vmax.f32 %v587_v24, 0.0 }
 0x149   : > { %1284 = vmatmul.bf16.gmra.mxu1 %v3500_v8  ;;  %v2883_v8 = vld [vmem:[%s4328_s5 + $0xd8] sm:$0xf0]  ;;  %v746_v48 = vmax.f32 %v676_v28, 0.0 }
 0x14a   : > { %v1103_v23 = vadd.f32 %v1102_v25, %v1014_v22  ;;  %v2886_v35 = vor.u32 %v3034_v7, %v2883_v8 }
 0x14c   : > { %1918 = vmatpush.bf16.msra.mxu1 %v2886_v35  ;;  %v1359_v55 = vmax.f32 %v1103_v23, 0.0 }
 0x14d   : > { %v588_v29 = vpop.f32.mrf.mxu0 }
 0x14e   : > { %v589_v31 = vadd.f32 %v588_v29, %v3446_v3  ;;  %v677_v34 = vpop.f32.mrf.mxu1 }
 0x14f   : > { %v678_v40 = vadd.f32 %v677_v34, %v3449_v4  ;;  %v1015_v41 = vpop.f32.mrf.mxu2 }
 0x150   : > { %v747_v43 = vmax.f32 %v589_v31, 0.0  ;;  %v1016_v44 = vadd.f32 %v1015_v41, %v3649_v39  ;;  %v1104_v45 = vpop.f32.mrf.mxu3 }
 0x151   : > { %v748_v51 = vmax.f32 %v678_v40, 0.0 }
 0x152   : > { %v1105_v52 = vadd.f32 %v1104_v45, %v1016_v44  ;;  %v3700_v53 = vpack.c.bf16 %v747_v43, %v745_v42  ;;  %v3016_v45 = vld [vmem:[%s4328_s5 + $0x44] sm:$0xf] }
 0x153   : > { %v3702_v54 = vpack.c.bf16 %v748_v51, %v746_v48  ;;  %v2811_v48 = vld [vmem:[%s4328_s5 + $0x48] sm:$0xf0] }
 0x154   : > { %v1361_v56 = vmax.f32 %v1105_v52, 0.0  ;;  %1057 = vmatmul.bf16.gmra.mxu2 %v3700_v53 }
 0x155   : > { %1146 = vmatmul.bf16.gmra.mxu3 %v3702_v54  ;;  %v591_v59 = vpop.f32.mrf.mxu0 }
 0x156   : > { %v680_v61 = vpop.f32.mrf.mxu1  ;;  %v3712_v62 = vpack.c.bf16 %v1361_v56, %v1359_v55  ;;  %v592_v14 = vadd.f32 %v591_v59, %v3446_v3  ;;  %v2814_v55 = vor.u32 %v3016_v45, %v2811_v48 }
 0x157   : > { %v1018_v63 = vpop.f32.mrf.mxu2  ;;  %v681_v15 = vadd.f32 %v680_v61, %v3449_v4 }
 0x158   : > { %v1019_v0 = vadd.f32 %v1018_v63, %v3649_v39  ;;  %v1107_v1 = vpop.f32.mrf.mxu3  ;;  %1200 = vmatmul.bf16.gmra.mxu0 %v3524_v32  ;;  %v749_v22 = vmax.f32 %v592_v14, 0.0 }
 0x159   : > { %1289 = vmatmul.bf16.gmra.mxu1 %v3526_v33  ;;  %v750_v26 = vmax.f32 %v681_v15, 0.0  ;;  %1830 = vmatpush.bf16.msra.mxu0 %v2814_v55 }
 0x15a   : > { %v1108_v6 = vadd.f32 %v1107_v1, %v1019_v0 }
 0x15c   : > { %v1363_v7 = vmax.f32 %v1108_v6, 0.0 }
 0x15d   : > { %v593_v16 = vpop.f32.mrf.mxu0 }
 0x15e   : > { %v594_v32 = vadd.f32 %v593_v16, %v3446_v3  ;;  %v682_v18 = vpop.f32.mrf.mxu1 }
 0x15f   : > { %v683_v33 = vadd.f32 %v682_v18, %v3449_v4  ;;  %v1020_v19 = vpop.f32.mrf.mxu2  ;;  %v2777_v18 = vld [vmem:[%s4328_s5] sm:$0xf] }
 0x160   : > { %v751_v25 = vmax.f32 %v594_v32, 0.0  ;;  %v1021_v23 = vadd.f32 %v1020_v19, %v3649_v39  ;;  %v1109_v24 = vpop.f32.mrf.mxu3 }
 0x161   : > { %v752_v27 = vmax.f32 %v683_v33, 0.0  ;;  %v3009_v33 = vld [vmem:[%s4328_s5 + $0x4] sm:$0xf0] }
 0x162   : > { %v1110_v28 = vadd.f32 %v1109_v24, %v1021_v23  ;;  %v3728_v29 = vpack.c.bf16 %v751_v25, %v749_v22  ;;  %v2778_v22 = vor.u32 %v3009_v33, %v2777_v18 }
 0x163   : > { %v3730_v30 = vpack.c.bf16 %v752_v27, %v750_v26  ;;  %v2841_v27 = vld [vmem:[%s4328_s5 + $0x80] sm:$0xf] }
 0x164   : > { %v1365_v8 = vmax.f32 %v1110_v28, 0.0  ;;  %1062 = vmatmul.bf16.gmra.mxu2 %v3728_v29  ;;  %v3025_v28 = vld [vmem:[%s4328_s5 + $0x84] sm:$0xf0] }
 0x165   : > { %1151 = vmatmul.bf16.gmra.mxu3 %v3730_v30  ;;  %v596_v31 = vpop.f32.mrf.mxu0  ;;  %1656 = vmatpush.bf16.msrb.mxu2 %v2778_v22 }
 0x166   : > { %v685_v34 = vpop.f32.mrf.mxu1  ;;  %v3734_v35 = vpack.c.bf16 %v1365_v8, %v1363_v7  ;;  %v597_v44 = vadd.f32 %v596_v31, %v3446_v3  ;;  %v2842_v8 = vor.u32 %v3025_v28, %v2841_v27 }
 0x167   : > { %v1023_v40 = vpop.f32.mrf.mxu2  ;;  %v686_v51 = vadd.f32 %v685_v34, %v3449_v4 }
 0x168   : > { %v1024_v41 = vadd.f32 %v1023_v40, %v3649_v39  ;;  %v1112_v42 = vpop.f32.mrf.mxu3  ;;  %1205 = vmatmul.bf16.gmra.mxu0 %v3538_v57  ;;  %v3032_v57 = vld [vmem:[%s4328_s5 + $0xc4] sm:$0xf]  ;;  %v753_v47 = vmax.f32 %v597_v44, 0.0  ;;  %1745 = vmatpush.bf16.msrb.mxu3 %v2842_v8 }
 0x169   : > { %1294 = vmatmul.bf16.gmra.mxu1 %v3540_v58  ;;  %v2875_v58 = vld [vmem:[%s4328_s5 + $0xc8] sm:$0xf0]  ;;  %v754_v2 = vmax.f32 %v686_v51, 0.0 }
 0x16a   : > { %v1113_v43 = vadd.f32 %v1112_v42, %v1024_v41  ;;  %v2878_v60 = vor.u32 %v3032_v57, %v2875_v58 }
 0x16c   : > { %1919 = vmatpush.bf16.msra.mxu1 %v2878_v60  ;;  %v1367_v15 = vmax.f32 %v1113_v43, 0.0 }
 0x16d   : > { %v598_v52 = vpop.f32.mrf.mxu0 }
 0x16e   : > { %v599_v56 = vadd.f32 %v598_v52, %v3446_v3  ;;  %v687_v59 = vpop.f32.mrf.mxu1 }
 0x16f   : > { %v688_v46 = vadd.f32 %v687_v59, %v3449_v4  ;;  %v1025_v61 = vpop.f32.mrf.mxu2 }
 0x170   : > { %v755_v63 = vmax.f32 %v599_v56, 0.0  ;;  %v1026_v0 = vadd.f32 %v1025_v61, %v3649_v39  ;;  %v1114_v1 = vpop.f32.mrf.mxu3 }
 0x171   : > { %v756_v5 = vmax.f32 %v688_v46, 0.0 }
 0x172   : > { %v1115_v6 = vadd.f32 %v1114_v1, %v1026_v0  ;;  %v3756_v9 = vpack.c.bf16 %v755_v63, %v753_v47 }
 0x173   : > { %v3758_v14 = vpack.c.bf16 %v756_v5, %v754_v2  ;;  %v3014_v5 = vld [vmem:[%s4328_s5 + $0x34] sm:$0xf] }
 0x174   : > { %v1369_v16 = vmax.f32 %v1115_v6, 0.0  ;;  %1067 = vmatmul.bf16.gmra.mxu2 %v3756_v9  ;;  %v2803_v6 = vld [vmem:[%s4328_s5 + $0x38] sm:$0xf0] }
 0x175   : > { %1156 = vmatmul.bf16.gmra.mxu3 %v3758_v14  ;;  %v601_v32 = vpop.f32.mrf.mxu0 }
 0x176   : > { %v690_v19 = vpop.f32.mrf.mxu1  ;;  %v3768_v25 = vpack.c.bf16 %v1369_v16, %v1367_v15  ;;  %v602_v31 = vadd.f32 %v601_v32, %v3446_v3  ;;  %v2806_v32 = vor.u32 %v3014_v5, %v2803_v6 }
 0x177   : > { %v1028_v23 = vpop.f32.mrf.mxu2  ;;  %v691_v34 = vadd.f32 %v690_v19, %v3449_v4 }
 0x178   : > { %v1029_v24 = vadd.f32 %v1028_v23, %v3649_v39  ;;  %v1117_v26 = vpop.f32.mrf.mxu3  ;;  %1210 = vmatmul.bf16.gmra.mxu0 %v3564_v20  ;;  %v757_v43 = vmax.f32 %v602_v31, 0.0 }
 0x179   : > { %1299 = vmatmul.bf16.gmra.mxu1 %v3566_v21  ;;  %v758_v51 = vmax.f32 %v691_v34, 0.0  ;;  %1831 = vmatpush.bf16.msra.mxu0 %v2806_v32 }
 0x17a   : > { %v1118_v7 = vadd.f32 %v1117_v26, %v1029_v24 }
 0x17c   : > { %v1371_v56 = vmax.f32 %v1118_v7, 0.0 }
 0x17d   : > { %v603_v40 = vpop.f32.mrf.mxu0 }
 0x17e   : > { %v604_v20 = vadd.f32 %v603_v40, %v3446_v3  ;;  %v692_v41 = vpop.f32.mrf.mxu1 }
 0x17f   : > { %v693_v21 = vadd.f32 %v692_v41, %v3449_v4  ;;  %v1030_v42 = vpop.f32.mrf.mxu2 }
 0x180   : > { %v759_v44 = vmax.f32 %v604_v20, 0.0  ;;  %v1031_v45 = vadd.f32 %v1030_v42, %v3649_v39  ;;  %v1119_v48 = vpop.f32.mrf.mxu3 }
 0x181   : > { %v760_v52 = vmax.f32 %v693_v21, 0.0  ;;  %v3047_v21 = vld [vmem:[%s4330_s7 + $0x38] sm:$0xff] }
 0x182   : > { %v1120_v55 = vadd.f32 %v1119_v48, %v1031_v45  ;;  %v3784_v57 = vpack.c.bf16 %v759_v44, %v757_v43  ;;  %2233 = vmatpush.bf16.msra.mxu2 %v3047_v21 }
 0x183   : > { %v3786_v58 = vpack.c.bf16 %v760_v52, %v758_v51 }
 0x184   : > { %v1373_v59 = vmax.f32 %v1120_v55, 0.0  ;;  %1072 = vmatmul.bf16.gmra.mxu2 %v3784_v57  ;;  %v3055_v55 = vld [vmem:[%s4330_s7 + $0x78] sm:$0xff] }
 0x185   : > { %1161 = vmatmul.bf16.gmra.mxu3 %v3786_v58  ;;  %v606_v60 = vpop.f32.mrf.mxu0 }
 0x186   : > { %v695_v46 = vpop.f32.mrf.mxu1  ;;  %v3790_v61 = vpack.c.bf16 %v1373_v59, %v1371_v56  ;;  %v607_v2 = vadd.f32 %v606_v60, %v3446_v3  ;;  %2322 = vmatpush.bf16.msra.mxu3 %v3055_v55 }
 0x187   : > { %v1033_v47 = vpop.f32.mrf.mxu2  ;;  %v696_v15 = vadd.f32 %v695_v46, %v3449_v4 }
 0x188   : > { %v1034_v63 = vadd.f32 %v1033_v47, %v3649_v39  ;;  %v1122_v0 = vpop.f32.mrf.mxu3  ;;  %1215 = vmatmul.bf16.gmra.mxu0 %v3590_v49  ;;  %v3030_v49 = vld [vmem:[%s4328_s5 + $0xb4] sm:$0xf]  ;;  %v761_v24 = vmax.f32 %v607_v2, 0.0 }
 0x189   : > { %1304 = vmatmul.bf16.gmra.mxu1 %v3592_v50  ;;  %v2867_v50 = vld [vmem:[%s4328_s5 + $0xb8] sm:$0xf0]  ;;  %v762_v7 = vmax.f32 %v696_v15, 0.0 }
 0x18a   : > { %v1123_v1 = vadd.f32 %v1122_v0, %v1034_v63  ;;  %v2870_v19 = vor.u32 %v3030_v49, %v2867_v50 }
 0x18c   : > { %1920 = vmatpush.bf16.msra.mxu1 %v2870_v19  ;;  %v1375_v20 = vmax.f32 %v1123_v1, 0.0 }
 0x18d   : > { %v608_v16 = vpop.f32.mrf.mxu0 }
 0x18e   : > { %v609_v18 = vadd.f32 %v608_v16, %v3446_v3  ;;  %v697_v33 = vpop.f32.mrf.mxu1 }
 0x18f   : > { %v698_v22 = vadd.f32 %v697_v33, %v3449_v4  ;;  %v1035_v23 = vpop.f32.mrf.mxu2 }
 0x190   : > { %v763_v26 = vmax.f32 %v609_v18, 0.0  ;;  %v1036_v27 = vadd.f32 %v1035_v23, %v3649_v39  ;;  %v1124_v28 = vpop.f32.mrf.mxu3 }
 0x191   : > { %v764_v8 = vmax.f32 %v698_v22, 0.0 }
 0x192   : > { %v1125_v31 = vadd.f32 %v1124_v28, %v1036_v27  ;;  %v3812_v34 = vpack.c.bf16 %v763_v26, %v761_v24  ;;  %v3012_v27 = vld [vmem:[%s4328_s5 + $0x24] sm:$0xf] }
 0x193   : > { %v3814_v40 = vpack.c.bf16 %v764_v8, %v762_v7  ;;  %v3028_v8 = vld [vmem:[%s4328_s5 + $0xa4] sm:$0xf] }
 0x194   : > { %v1377_v41 = vmax.f32 %v1125_v31, 0.0  ;;  %1077 = vmatmul.bf16.gmra.mxu2 %v3812_v34 }
 0x195   : > { %1166 = vmatmul.bf16.gmra.mxu3 %v3814_v40  ;;  %v611_v42 = vpop.f32.mrf.mxu0 }
 0x196   : > { %v700_v43 = vpop.f32.mrf.mxu1  ;;  %v3821_v44 = vpack.c.bf16 %v1377_v41, %v1375_v20  ;;  %v612_v56 = vadd.f32 %v611_v42, %v3446_v3 }
 0x197   : > { %v1038_v45 = vpop.f32.mrf.mxu2  ;;  %v701_v59 = vadd.f32 %v700_v43, %v3449_v4 }
 0x198   : > { %v1039_v48 = vadd.f32 %v1038_v45, %v3649_v39  ;;  %v1127_v51 = vpop.f32.mrf.mxu3  ;;  %1220 = vmatmul.bf16.gmra.mxu0 %v3614_v12  ;;  %v765_v12 = vmax.f32 %v612_v56, 0.0 }
 0x199   : > { %1309 = vmatmul.bf16.gmra.mxu1 %v3616_v13  ;;  %v766_v5 = vmax.f32 %v701_v59, 0.0 }
 0x19a   : > { %v1128_v52 = vadd.f32 %v1127_v51, %v1039_v48 }
 0x19c   : > { %v1379_v49 = vmax.f32 %v1128_v52, 0.0 }
 0x19d   : > { %v613_v60 = vpop.f32.mrf.mxu0 }
 0x19e   : > { %v614_v46 = vadd.f32 %v613_v60, %v3446_v3  ;;  %v702_v47 = vpop.f32.mrf.mxu1  ;;  %v3046_v60 = vld [vmem:[%s4330_s7 + $0x30] sm:$0xff] }
 0x19f   : > { %v703_v63 = vadd.f32 %v702_v47, %v3449_v4  ;;  %v1040_v0 = vpop.f32.mrf.mxu2  ;;  %v3841_v4 = vperm.slane %v3641_v36, 1  ;;  %v2795_v36 = vld [vmem:[%s4328_s5 + $0x28] sm:$0xf0]  ;;  %2234 = vmatpush.bf16.msra.mxu2 %v3046_v60 }
 0x1a0   : > { %v767_v1 = vmax.f32 %v614_v46, 0.0  ;;  %v1041_v13 = vadd.f32 %v1040_v0, %v3649_v39  ;;  %v1129_v2 = vpop.f32.mrf.mxu3  ;;  %v2798_v7 = vor.u32 %v3012_v27, %v2795_v36 }
 0x1a1   : > { %v768_v6 = vmax.f32 %v703_v63, 0.0 }
 0x1a2   : > { %v1130_v15 = vadd.f32 %v1129_v2, %v1041_v13  ;;  %v3834_v16 = vpack.c.bf16 %v767_v1, %v765_v12  ;;  %1832 = vmatpush.bf16.msra.mxu0 %v2798_v7 }
 0x1a3   : > { %v3836_v32 = vpack.c.bf16 %v768_v6, %v766_v5  ;;  %v3054_v5 = vld [vmem:[%s4330_s7 + $0x70] sm:$0xff] }
 0x1a4   : > { %v1381_v50 = vmax.f32 %v1130_v15, 0.0  ;;  %1082 = vmatmul.bf16.gmra.mxu2 %v3834_v16  ;;  %2323 = vmatpush.bf16.msra.mxu3 %v3054_v5  ;;  %v3045_v5 = vld [vmem:[%s4330_s7 + $0x28] sm:$0xff] }
 0x1a5   : > { %1171 = vmatmul.bf16.gmra.mxu3 %v3836_v32  ;;  %v1186_v3 = vpop.f32.mrf.mxu0  ;;  %2235 = vmatpush.bf16.msra.mxu2 %v3045_v5 }
 0x1a6   : > { %v1275_v18 = vpop.f32.mrf.mxu1  ;;  %v3843_v33 = vpack.c.bf16 %v1381_v50, %v1379_v49  ;;  %v1187_v24 = vadd.f32 %v1186_v3, %v3841_v4 }
 0x1a7   : > { %v1043_v19 = vpop.f32.mrf.mxu2 }
 0x1a8   : > { %v1044_v22 = vadd.f32 %v1043_v19, %v3649_v39  ;;  %v1132_v23 = vpop.f32.mrf.mxu3  ;;  %1225 = vmatmul.bf16.gmra.mxu0 %v3643_v37  ;;  %v2859_v37 = vld [vmem:[%s4328_s5 + $0xa8] sm:$0xf0] }
 0x1a9   : > { %1314 = vmatmul.bf16.gmra.mxu1 %v3645_v38  ;;  %v1276_v38 = vadd.f32 %v1275_v18, %v1187_v24  ;;  %v2862_v41 = vor.u32 %v3028_v8, %v2859_v37 }
 0x1aa   : > { %v1133_v26 = vadd.f32 %v1132_v23, %v1044_v22 }
 0x1ab   : > { %1921 = vmatpush.bf16.msra.mxu1 %v2862_v41  ;;  %v1356_v48 = vmax.f32 %v1276_v38, 0.0  ;;  %v3010_v41 = vld [vmem:[%s4328_s5 + $0x14] sm:$0xf] }
 0x1ac   : > { %v1383_v55 = vmax.f32 %v1133_v26, 0.0 }
 0x1ad   : > { %v1188_v28 = vpop.f32.mrf.mxu0 }
 0x1ae   : > { %v1189_v31 = vadd.f32 %v1188_v28, %v3841_v4  ;;  %v1277_v20 = vpop.f32.mrf.mxu1 }
 0x1af   : > { %v1045_v21 = vpop.f32.mrf.mxu2 }
 0x1b0   : > { %v1278_v42 = vadd.f32 %v1277_v20, %v1189_v31  ;;  %v1046_v43 = vadd.f32 %v1045_v21, %v3649_v39  ;;  %v1134_v45 = vpop.f32.mrf.mxu3  ;;  %v2787_v21 = vld [vmem:[%s4328_s5 + $0x18] sm:$0xf0] }
 0x1b2   : > { %v1358_v51 = vmax.f32 %v1278_v42, 0.0  ;;  %v1135_v52 = vadd.f32 %v1134_v45, %v1046_v43  ;;  %v2790_v43 = vor.u32 %v3010_v41, %v2787_v21  ;;  %v3026_v45 = vld [vmem:[%s4328_s5 + $0x94] sm:$0xf] }
 0x1b4   : > { %v3863_v56 = vpack.c.bf16 %v1358_v51, %v1356_v48  ;;  %v1385_v59 = vmax.f32 %v1135_v52, 0.0  ;;  %1657 = vmatmul.bf16.vlgmr.msrb.gmra.mxu2 %v3678_v17  ;;  %1833 = vmatpush.bf16.msra.mxu0 %v2790_v43 }
 0x1b5   : > { %v1191_v46 = vpop.f32.mrf.mxu0 }
 0x1b6   : > { %v1280_v47 = vpop.f32.mrf.mxu1  ;;  %1746 = vmatmul.bf16.vlgmr.msrb.gmra.mxu3 %v3863_v56  ;;  %v3870_v63 = vpack.c.bf16 %v1385_v59, %v1383_v55  ;;  %v1192_v13 = vadd.f32 %v1191_v46, %v3841_v4 }
 0x1b7   : > { %v1048_v0 = vpop.f32.mrf.mxu2 }
 0x1b8   : > { %v1049_v12 = vadd.f32 %v1048_v0, %v3649_v39  ;;  %v1137_v1 = vpop.f32.mrf.mxu3  ;;  %1230 = vmatmul.bf16.gmra.mxu0 %v3672_v10  ;;  %v1281_v15 = vadd.f32 %v1280_v47, %v1192_v13 }
 0x1b9   : > { %1319 = vmatmul.bf16.gmra.mxu1 %v3674_v11 }
 0x1ba   : > { %v1138_v2 = vadd.f32 %v1137_v1, %v1049_v12  ;;  %v1360_v22 = vmax.f32 %v1281_v15, 0.0 }
 0x1bc   : > { %v1387_v24 = vmax.f32 %v1138_v2, 0.0 }
 0x1bd   : > { %v1193_v6 = vpop.f32.mrf.mxu0 }
 0x1be   : > { %v1194_v49 = vadd.f32 %v1193_v6, %v3841_v4  ;;  %v1282_v50 = vpop.f32.mrf.mxu1 }
 0x1bf   : > { %v1050_v3 = vpop.f32.mrf.mxu2 }
 0x1c0   : > { %v1283_v18 = vadd.f32 %v1282_v50, %v1194_v49  ;;  %v1051_v19 = vadd.f32 %v1050_v3, %v3649_v39  ;;  %v1139_v10 = vpop.f32.mrf.mxu3 }
 0x1c2   : > { %v1362_v11 = vmax.f32 %v1283_v18, 0.0  ;;  %v1140_v23 = vadd.f32 %v1139_v10, %v1051_v19 }
 0x1c4   : > { %v1389_v26 = vmax.f32 %v1140_v23, 0.0  ;;  %1662 = vmatmul.bf16.gmra.mxu2 %v3712_v62  ;;  %v3882_v27 = vpack.c.bf16 %v1362_v11, %v1360_v22  ;;  %v3053_v22 = vld [vmem:[%s4330_s7 + $0x68] sm:$0xff] }
 0x1c5   : > { %v1196_v36 = vpop.f32.mrf.mxu0  ;;  %2324 = vmatpush.bf16.msra.mxu3 %v3053_v22  ;;  %v3044_v22 = vld [vmem:[%s4330_s7 + $0x20] sm:$0xff] }
 0x1c6   : > { %v1285_v28 = vpop.f32.mrf.mxu1  ;;  %1751 = vmatmul.bf16.gmra.mxu3 %v3882_v27  ;;  %v3885_v7 = vpack.c.bf16 %v1389_v26, %v1387_v24  ;;  %v1197_v31 = vadd.f32 %v1196_v36, %v3841_v4  ;;  %2236 = vmatpush.bf16.msra.mxu2 %v3044_v22 }
 0x1c7   : > { %v1053_v8 = vpop.f32.mrf.mxu2 }
 0x1c8   : > { %v1054_v37 = vadd.f32 %v1053_v8, %v3649_v39  ;;  %v1142_v38 = vpop.f32.mrf.mxu3  ;;  %1235 = vmatmul.bf16.gmra.mxu0 %v3700_v53  ;;  %v2851_v53 = vld [vmem:[%s4328_s5 + $0x98] sm:$0xf0] }
 0x1c9   : > { %1324 = vmatmul.bf16.gmra.mxu1 %v3702_v54  ;;  %v1286_v54 = vadd.f32 %v1285_v28, %v1197_v31  ;;  %v2854_v52 = vor.u32 %v3026_v45, %v2851_v53 }
 0x1ca   : > { %v1143_v20 = vadd.f32 %v1142_v38, %v1054_v37 }
 0x1cb   : > { %1922 = vmatpush.bf16.msra.mxu1 %v2854_v52  ;;  %v1364_v47 = vmax.f32 %v1286_v54, 0.0  ;;  %v3008_v52 = vld [vmem:[%s4328_s5 + $0x4] sm:$0xf] }
 0x1cc   : > { %v1391_v1 = vmax.f32 %v1143_v20, 0.0 }
 0x1cd   : > { %v1198_v42 = vpop.f32.mrf.mxu0 }
 0x1ce   : > { %v1199_v48 = vadd.f32 %v1198_v42, %v3841_v4  ;;  %v1287_v51 = vpop.f32.mrf.mxu1 }
 0x1cf   : > { %v1055_v55 = vpop.f32.mrf.mxu2 }
 0x1d0   : > { %v1288_v59 = vadd.f32 %v1287_v51, %v1199_v48  ;;  %v1056_v60 = vadd.f32 %v1055_v55, %v3649_v39  ;;  %v1144_v46 = vpop.f32.mrf.mxu3  ;;  %v2779_v55 = vld [vmem:[%s4328_s5 + $0x8] sm:$0xf0] }
 0x1d2   : > { %v1366_v0 = vmax.f32 %v1288_v59, 0.0  ;;  %v1145_v12 = vadd.f32 %v1144_v46, %v1056_v60  ;;  %v2782_v60 = vor.u32 %v3008_v52, %v2779_v55  ;;  %v3024_v46 = vld [vmem:[%s4328_s5 + $0x84] sm:$0xf] }
 0x1d4   : > { %v1393_v13 = vmax.f32 %v1145_v12, 0.0  ;;  %1667 = vmatmul.bf16.gmra.mxu2 %v3734_v35  ;;  %v3906_v2 = vpack.c.bf16 %v1366_v0, %v1364_v47  ;;  %1834 = vmatpush.bf16.msra.mxu0 %v2782_v60 }
 0x1d5   : > { %v1201_v6 = vpop.f32.mrf.mxu0 }
 0x1d6   : > { %v1290_v15 = vpop.f32.mrf.mxu1  ;;  %1756 = vmatmul.bf16.gmra.mxu3 %v3906_v2  ;;  %v3912_v49 = vpack.c.bf16 %v1393_v13, %v1391_v1  ;;  %v1202_v19 = vadd.f32 %v1201_v6, %v3841_v4 }
 0x1d7   : > { %v1058_v50 = vpop.f32.mrf.mxu2 }
 0x1d8   : > { %v1059_v3 = vadd.f32 %v1058_v50, %v3649_v39  ;;  %v1147_v18 = vpop.f32.mrf.mxu3  ;;  %1240 = vmatmul.bf16.gmra.mxu0 %v3728_v29  ;;  %v1291_v23 = vadd.f32 %v1290_v15, %v1202_v19 }
 0x1d9   : > { %1329 = vmatmul.bf16.gmra.mxu1 %v3730_v30 }
 0x1da   : > { %v1148_v10 = vadd.f32 %v1147_v18, %v1059_v3  ;;  %v1368_v37 = vmax.f32 %v1291_v23, 0.0 }
 0x1dc   : > { %v1395_v31 = vmax.f32 %v1148_v10, 0.0 }
 0x1dd   : > { %v1203_v11 = vpop.f32.mrf.mxu0 }
 0x1de   : > { %v1204_v24 = vadd.f32 %v1203_v11, %v3841_v4  ;;  %v1292_v26 = vpop.f32.mrf.mxu1 }
 0x1df   : > { %v1060_v36 = vpop.f32.mrf.mxu2 }
 0x1e0   : > { %v1293_v28 = vadd.f32 %v1292_v26, %v1204_v24  ;;  %v1061_v8 = vadd.f32 %v1060_v36, %v3649_v39  ;;  %v1149_v29 = vpop.f32.mrf.mxu3 }
 0x1e2   : > { %v1370_v30 = vmax.f32 %v1293_v28, 0.0  ;;  %v1150_v38 = vadd.f32 %v1149_v29, %v1061_v8 }
 0x1e4   : > { %v1397_v20 = vmax.f32 %v1150_v38, 0.0  ;;  %1672 = vmatmul.bf16.gmra.mxu2 %v3768_v25  ;;  %v3924_v41 = vpack.c.bf16 %v1370_v30, %v1368_v37  ;;  %v3052_v37 = vld [vmem:[%s4330_s7 + $0x60] sm:$0xff] }
 0x1e5   : > { %v1206_v21 = vpop.f32.mrf.mxu0  ;;  %2325 = vmatpush.bf16.msra.mxu3 %v3052_v37 }
 0x1e6   : > { %v1295_v42 = vpop.f32.mrf.mxu1  ;;  %1761 = vmatmul.bf16.gmra.mxu3 %v3924_v41  ;;  %v3927_v43 = vpack.c.bf16 %v1397_v20, %v1395_v31  ;;  %v1207_v48 = vadd.f32 %v1206_v21, %v3841_v4 }
 0x1e7   : > { %v1063_v45 = vpop.f32.mrf.mxu2 }
 0x1e8   : > { %v1064_v53 = vadd.f32 %v1063_v45, %v3649_v39  ;;  %v1152_v54 = vpop.f32.mrf.mxu3  ;;  %1245 = vmatmul.bf16.gmra.mxu0 %v3756_v9  ;;  %v2843_v9 = vld [vmem:[%s4328_s5 + $0x88] sm:$0xf0] }
 0x1e9   : > { %1334 = vmatmul.bf16.gmra.mxu1 %v3758_v14  ;;  %v1296_v14 = vadd.f32 %v1295_v42, %v1207_v48  ;;  %v2846_v12 = vor.u32 %v3024_v46, %v2843_v9 }
 0x1ea   : > { %v1153_v51 = vadd.f32 %v1152_v54, %v1064_v53 }
 0x1eb   : > { %1923 = vmatpush.bf16.msra.mxu1 %v2846_v12  ;;  %v1372_v15 = vmax.f32 %v1296_v14, 0.0 }
 0x1ec   : > { %v1399_v18 = vmax.f32 %v1153_v51, 0.0 }
 0x1ed   : > { %v1208_v59 = vpop.f32.mrf.mxu0 }
 0x1ee   : > { %v1209_v47 = vadd.f32 %v1208_v59, %v3841_v4  ;;  %v1297_v0 = vpop.f32.mrf.mxu1 }
 0x1ef   : > { %v1065_v1 = vpop.f32.mrf.mxu2 }
 0x1f0   : > { %v1298_v13 = vadd.f32 %v1297_v0, %v1209_v47  ;;  %v1066_v5 = vadd.f32 %v1065_v1, %v3649_v39  ;;  %v1154_v6 = vpop.f32.mrf.mxu3 }
 0x1f2   : > { %v1374_v50 = vmax.f32 %v1298_v13, 0.0  ;;  %v1155_v3 = vadd.f32 %v1154_v6, %v1066_v5 }
 0x1f4   : > { %v1401_v19 = vmax.f32 %v1155_v3, 0.0  ;;  %1677 = vmatmul.bf16.gmra.mxu2 %v3790_v61  ;;  %v3948_v10 = vpack.c.bf16 %v1374_v50, %v1372_v15 }
 0x1f5   : > { %v1211_v11 = vpop.f32.mrf.mxu0 }
 0x1f6   : > { %v1300_v23 = vpop.f32.mrf.mxu1  ;;  %1766 = vmatmul.bf16.gmra.mxu3 %v3948_v10  ;;  %v3954_v24 = vpack.c.bf16 %v1401_v19, %v1399_v18  ;;  %v1212_v8 = vadd.f32 %v1211_v11, %v3841_v4 }
 0x1f7   : > { %v1068_v26 = vpop.f32.mrf.mxu2 }
 0x1f8   : > { %v1069_v36 = vadd.f32 %v1068_v26, %v3649_v39  ;;  %v1157_v28 = vpop.f32.mrf.mxu3  ;;  %1250 = vmatmul.bf16.gmra.mxu0 %v3784_v57  ;;  %v1301_v38 = vadd.f32 %v1300_v23, %v1212_v8  ;;  %v3043_v23 = vld [vmem:[%s4330_s7 + $0x18] sm:$0xff] }
 0x1f9   : > { %1339 = vmatmul.bf16.gmra.mxu1 %v3786_v58  ;;  %2237 = vmatpush.bf16.msra.mxu2 %v3043_v23 }
 0x1fa   : > { %v1158_v29 = vadd.f32 %v1157_v28, %v1069_v36  ;;  %v1376_v53 = vmax.f32 %v1301_v38, 0.0 }
 0x1fc   : > { %v1403_v48 = vmax.f32 %v1158_v29, 0.0 }
 0x1fd   : > { %v1213_v30 = vpop.f32.mrf.mxu0 }
 0x1fe   : > { %v1214_v31 = vadd.f32 %v1213_v30, %v3841_v4  ;;  %v1302_v20 = vpop.f32.mrf.mxu1 }
 0x1ff   : > { %v1070_v21 = vpop.f32.mrf.mxu2 }
 0x200   : > { %v1303_v42 = vadd.f32 %v1302_v20, %v1214_v31  ;;  %v1071_v45 = vadd.f32 %v1070_v21, %v3649_v39  ;;  %v1159_v57 = vpop.f32.mrf.mxu3  ;;  %v3051_v31 = vld [vmem:[%s4330_s7 + $0x58] sm:$0xff] }
 0x201   : > { %2326 = vmatpush.bf16.msra.mxu3 %v3051_v31 }
 0x202   : > { %v1378_v58 = vmax.f32 %v1303_v42, 0.0  ;;  %v1160_v54 = vadd.f32 %v1159_v57, %v1071_v45 }
 0x204   : > { %v1405_v51 = vmax.f32 %v1160_v54, 0.0  ;;  %1682 = vmatmul.bf16.gmra.mxu2 %v3821_v44  ;;  %v3966_v52 = vpack.c.bf16 %v1378_v58, %v1376_v53 }
 0x205   : > { %v1216_v55 = vpop.f32.mrf.mxu0 }
 0x206   : > { %v1305_v59 = vpop.f32.mrf.mxu1  ;;  %1771 = vmatmul.bf16.gmra.mxu3 %v3966_v52  ;;  %v3969_v60 = vpack.c.bf16 %v1405_v51, %v1403_v48  ;;  %v1217_v47 = vadd.f32 %v1216_v55, %v3841_v4 }
 0x207   : > { %v1073_v46 = vpop.f32.mrf.mxu2 }
 0x208   : > { %v1074_v9 = vadd.f32 %v1073_v46, %v3649_v39  ;;  %v1162_v14 = vpop.f32.mrf.mxu3  ;;  %1255 = vmatmul.bf16.gmra.mxu0 %v3812_v34  ;;  %v1306_v1 = vadd.f32 %v1305_v59, %v1217_v47 }
 0x209   : > { %1344 = vmatmul.bf16.gmra.mxu1 %v3814_v40 }
 0x20a   : > { %v1163_v0 = vadd.f32 %v1162_v14, %v1074_v9  ;;  %v1380_v18 = vmax.f32 %v1306_v1, 0.0 }
 0x20c   : > { %v1407_v11 = vmax.f32 %v1163_v0, 0.0 }
 0x20d   : > { %v1218_v12 = vpop.f32.mrf.mxu0 }
 0x20e   : > { %v1219_v13 = vadd.f32 %v1218_v12, %v3841_v4  ;;  %v1307_v5 = vpop.f32.mrf.mxu1 }
 0x20f   : > { %v1075_v6 = vpop.f32.mrf.mxu2 }
 0x210   : > { %v1308_v15 = vadd.f32 %v1307_v5, %v1219_v13  ;;  %v1076_v50 = vadd.f32 %v1075_v6, %v3649_v39  ;;  %v1164_v3 = vpop.f32.mrf.mxu3 }
 0x212   : > { %v1382_v19 = vmax.f32 %v1308_v15, 0.0  ;;  %v1165_v22 = vadd.f32 %v1164_v3, %v1076_v50 }
 0x214   : > { %v1409_v34 = vmax.f32 %v1165_v22, 0.0  ;;  %1687 = vmatmul.bf16.gmra.mxu2 %v3843_v33  ;;  %v3978_v40 = vpack.c.bf16 %v1382_v19, %v1380_v18 }
 0x215   : > { %v1221_v26 = vpop.f32.mrf.mxu0 }
 0x216   : > { %v1310_v36 = vpop.f32.mrf.mxu1  ;;  %1776 = vmatmul.bf16.gmra.mxu3 %v3978_v40  ;;  %v3984_v28 = vpack.c.bf16 %v1409_v34, %v1407_v11  ;;  %v1222_v30 = vadd.f32 %v1221_v26, %v3841_v4  ;;  %v4010_v11 = vld [vmem:[%s4329_s6] sm:$0x3] }
 0x217   : > { %v1078_v8 = vpop.f32.mrf.mxu2 }
 0x218   : > { %v1079_v29 = vadd.f32 %v1078_v8, %v3649_v39  ;;  %v1167_v37 = vpop.f32.mrf.mxu3  ;;  %1260 = vmatmul.bf16.gmra.mxu0 %v3834_v16  ;;  %v1311_v21 = vadd.f32 %v1310_v36, %v1222_v30  ;;  %v4016_v8 = vperm.slane %v4010_v11, 0 }
 0x219   : > { %1349 = vmatmul.bf16.gmra.mxu1 %v3836_v32 }
 0x21a   : > { %v1168_v38 = vadd.f32 %v1167_v37, %v1079_v29  ;;  %v1384_v54 = vmax.f32 %v1311_v21, 0.0 }
 0x21c   : > { %v1411_v51 = vmax.f32 %v1168_v38, 0.0 }
 0x21d   : > { %v1223_v20 = vpop.f32.mrf.mxu0 }
 0x21e   : > { %v1224_v42 = vadd.f32 %v1223_v20, %v3841_v4  ;;  %v1312_v45 = vpop.f32.mrf.mxu1 }
 0x21f   : > { %v1080_v57 = vpop.f32.mrf.mxu2 }
 0x220   : > { %v1313_v53 = vadd.f32 %v1312_v45, %v1224_v42  ;;  %v1081_v58 = vadd.f32 %v1080_v57, %v3649_v39  ;;  %v1169_v16 = vpop.f32.mrf.mxu3  ;;  %v3050_v45 = vld [vmem:[%s4330_s7 + $0x50] sm:$0xff] }
 0x221   : > { %2327 = vmatpush.bf16.msra.mxu3 %v3050_v45 }
 0x222   : > { %v1386_v32 = vmax.f32 %v1313_v53, 0.0  ;;  %v1170_v48 = vadd.f32 %v1169_v16, %v1081_v58 }
 0x224   : > { %v1413_v55 = vmax.f32 %v1170_v48, 0.0  ;;  %1692 = vmatmul.bf16.gmra.mxu2 %v3870_v63  ;;  %v3996_v59 = vpack.c.bf16 %v1386_v32, %v1384_v54 }
 0x225   : > { %v1226_v46 = vpop.f32.mrf.mxu0 }
 0x226   : > { %v1315_v9 = vpop.f32.mrf.mxu1  ;;  %1781 = vmatmul.bf16.gmra.mxu3 %v3996_v59  ;;  %v3999_v14 = vpack.c.bf16 %v1413_v55, %v1411_v51  ;;  %v1227_v1 = vadd.f32 %v1226_v46, %v3841_v4 }
 0x227   : > { %v1083_v47 = vpop.f32.mrf.mxu2 }
 0x228   : > { %v1084_v0 = vadd.f32 %v1083_v47, %v3649_v39  ;;  %v1172_v12 = vpop.f32.mrf.mxu3  ;;  %1835 = vmatmul.bf16.vlgmr.msra.gmra.mxu0 %v3678_v17  ;;  %v1316_v6 = vadd.f32 %v1315_v9, %v1227_v1 }
 0x229   : > { %1924 = vmatmul.bf16.vlgmr.msra.gmra.mxu1 %v3863_v56 }
 0x22a   : > { %v1173_v13 = vadd.f32 %v1172_v12, %v1084_v0  ;;  %v1388_v17 = vmax.f32 %v1316_v6, 0.0 }
 0x22c   : > { %v1415_v23 = vmax.f32 %v1173_v13, 0.0 }
 0x22d   : > { %v1228_v5 = vpop.f32.mrf.mxu0 }
 0x22e   : > { %v1229_v15 = vadd.f32 %v1228_v5, %v3841_v4  ;;  %v1317_v50 = vpop.f32.mrf.mxu1 }
 0x22f   : > { %v1085_v3 = vpop.f32.mrf.mxu2 }
 0x230   : > { %v1318_v18 = vadd.f32 %v1317_v50, %v1229_v15  ;;  %v1086_v19 = vadd.f32 %v1085_v3, %v3649_v39  ;;  %v1174_v22 = vpop.f32.mrf.mxu3  ;;  %v3042_v39 = vld [vmem:[%s4330_s7 + $0x10] sm:$0xff] }
 0x231   : > { %2238 = vmatpush.bf16.msra.mxu2 %v3042_v39 }
 0x232   : > { %v1390_v56 = vmax.f32 %v1318_v18, 0.0  ;;  %v1175_v34 = vadd.f32 %v1174_v22, %v1086_v19 }
 0x234   : > { %v1417_v26 = vmax.f32 %v1175_v34, 0.0  ;;  %1697 = vmatmul.bf16.gmra.mxu2 %v3885_v7  ;;  %v4013_v36 = vpack.c.bf16 %v1390_v56, %v1388_v17 }
 0x235   : > { %v1231_v29 = vpop.f32.mrf.mxu0 }
 0x236   : > { %v1320_v37 = vpop.f32.mrf.mxu1  ;;  %1786 = vmatmul.bf16.gmra.mxu3 %v4013_v36  ;;  %v4022_v30 = vpack.c.bf16 %v1417_v26, %v1415_v23  ;;  %v1232_v21 = vadd.f32 %v1231_v29, %v3841_v4 }
 0x237   : > { %v1658_v38 = vpop.f32.mrf.mxu2 }
 0x238   : > { %v1659_v31 = vadd.f32 %v1658_v38, %v4016_v8  ;;  %1840 = vmatmul.bf16.gmra.mxu0 %v3712_v62  ;;  %v1321_v53 = vadd.f32 %v1320_v37, %v1232_v21  ;;  %v3041_v38 = vld [vmem:[%s4330_s7 + $0x8] sm:$0xff] }
 0x239   : > { %1929 = vmatmul.bf16.gmra.mxu1 %v3882_v27  ;;  %v1747_v20 = vpop.f32.mrf.mxu3  ;;  %2239 = vmatpush.bf16.msra.mxu2 %v3041_v38 }
 0x23a   : > { %v1748_v42 = vadd.f32 %v1747_v20, %v1659_v31  ;;  %v1392_v27 = vmax.f32 %v1321_v53, 0.0 }
 0x23c   : > { %v2005_v46 = vmax.f32 %v1748_v42, 0.0 }
 0x23d   : > { %v1233_v57 = vpop.f32.mrf.mxu0 }
 0x23e   : > { %v1234_v58 = vadd.f32 %v1233_v57, %v3841_v4  ;;  %v1322_v16 = vpop.f32.mrf.mxu1 }
 0x23f   : > { %v1660_v54 = vpop.f32.mrf.mxu2 }
 0x240   : > { %v1323_v32 = vadd.f32 %v1322_v16, %v1234_v58  ;;  %v1661_v62 = vadd.f32 %v1660_v54, %v4016_v8  ;;  %v3049_v16 = vld [vmem:[%s4330_s7 + $0x48] sm:$0xff] }
 0x241   : > { %v1749_v48 = vpop.f32.mrf.mxu3  ;;  %2328 = vmatpush.bf16.msra.mxu3 %v3049_v16 }
 0x242   : > { %v1394_v51 = vmax.f32 %v1323_v32, 0.0  ;;  %v1750_v55 = vadd.f32 %v1749_v48, %v1661_v62 }
 0x244   : > { %v2007_v9 = vmax.f32 %v1750_v55, 0.0  ;;  %1702 = vmatmul.bf16.gmra.mxu2 %v3912_v49  ;;  %v4034_v47 = vpack.c.bf16 %v1394_v51, %v1392_v27 }
 0x245   : > { %v1236_v0 = vpop.f32.mrf.mxu0 }
 0x246   : > { %v4036_v12 = vpack.c.bf16 %v2007_v9, %v2005_v46  ;;  %v1325_v1 = vpop.f32.mrf.mxu1  ;;  %1791 = vmatmul.bf16.gmra.mxu3 %v4034_v47  ;;  %v1237_v15 = vadd.f32 %v1236_v0, %v3841_v4 }
 0x247   : > { %v1663_v13 = vpop.f32.mrf.mxu2 }
 0x248   : > { %v1664_v5 = vadd.f32 %v1663_v13, %v4016_v8  ;;  %1845 = vmatmul.bf16.gmra.mxu0 %v3734_v35  ;;  %v1326_v18 = vadd.f32 %v1325_v1, %v1237_v15 }
 0x249   : > { %1934 = vmatmul.bf16.gmra.mxu1 %v3906_v2  ;;  %v1752_v6 = vpop.f32.mrf.mxu3 }
 0x24a   : > { %v1753_v50 = vadd.f32 %v1752_v6, %v1664_v5  ;;  %v1396_v26 = vmax.f32 %v1326_v18, 0.0 }
 0x24c   : > { %v2009_v35 = vmax.f32 %v1753_v50, 0.0 }
 0x24d   : > { %v1238_v3 = vpop.f32.mrf.mxu0 }
 0x24e   : > { %v1239_v19 = vadd.f32 %v1238_v3, %v3841_v4  ;;  %v1327_v22 = vpop.f32.mrf.mxu1 }
 0x24f   : > { %v1665_v17 = vpop.f32.mrf.mxu2 }
 0x250   : > { %v1328_v56 = vadd.f32 %v1327_v22, %v1239_v19  ;;  %v1666_v34 = vadd.f32 %v1665_v17, %v4016_v8 }
 0x251   : > { %v1754_v23 = vpop.f32.mrf.mxu3 }
 0x252   : > { %v1398_v39 = vmax.f32 %v1328_v56, 0.0  ;;  %v1755_v29 = vadd.f32 %v1754_v23, %v1666_v34 }
 0x254   : > { %v2011_v37 = vmax.f32 %v1755_v29, 0.0  ;;  %1707 = vmatmul.bf16.gmra.mxu2 %v3927_v43  ;;  %v4046_v2 = vpack.c.bf16 %v1398_v39, %v1396_v26 }
 0x255   : > { %v1241_v31 = vpop.f32.mrf.mxu0 }
 0x256   : > { %v1330_v20 = vpop.f32.mrf.mxu1  ;;  %1796 = vmatmul.bf16.gmra.mxu3 %v4046_v2  ;;  %v4052_v21 = vpack.c.bf16 %v2011_v37, %v2009_v35  ;;  %v1242_v53 = vadd.f32 %v1241_v31, %v3841_v4 }
 0x257   : > { %v1668_v42 = vpop.f32.mrf.mxu2 }
 0x258   : > { %v1669_v45 = vadd.f32 %v1668_v42, %v4016_v8  ;;  %1850 = vmatmul.bf16.gmra.mxu0 %v3768_v25  ;;  %v1331_v32 = vadd.f32 %v1330_v20, %v1242_v53  ;;  %v3040_v42 = vld [vmem:[%s4330_s7] sm:$0xff] }
 0x259   : > { %1939 = vmatmul.bf16.gmra.mxu1 %v3924_v41  ;;  %v1757_v57 = vpop.f32.mrf.mxu3  ;;  %2240 = vmatpush.bf16.msra.mxu2 %v3040_v42 }
 0x25a   : > { %v1758_v58 = vadd.f32 %v1757_v57, %v1669_v45  ;;  %v1400_v41 = vmax.f32 %v1331_v32, 0.0 }
 0x25c   : > { %v2013_v0 = vmax.f32 %v1758_v58, 0.0 }
 0x25d   : > { %v1243_v54 = vpop.f32.mrf.mxu0 }
 0x25e   : > { %v1244_v62 = vadd.f32 %v1243_v54, %v3841_v4  ;;  %v1332_v48 = vpop.f32.mrf.mxu1 }
 0x25f   : > { %v1670_v27 = vpop.f32.mrf.mxu2 }
 0x260   : > { %v1333_v51 = vadd.f32 %v1332_v48, %v1244_v62  ;;  %v1671_v25 = vadd.f32 %v1670_v27, %v4016_v8  ;;  %v3048_v48 = vld [vmem:[%s4330_s7 + $0x40] sm:$0xff] }
 0x261   : > { %v1759_v55 = vpop.f32.mrf.mxu3  ;;  %2329 = vmatpush.bf16.msra.mxu3 %v3048_v48 }
 0x262   : > { %v1402_v46 = vmax.f32 %v1333_v51, 0.0  ;;  %v1760_v9 = vadd.f32 %v1759_v55, %v1671_v25 }
 0x264   : > { %v2015_v1 = vmax.f32 %v1760_v9, 0.0  ;;  %1712 = vmatmul.bf16.gmra.mxu2 %v3954_v24  ;;  %v4064_v13 = vpack.c.bf16 %v1402_v46, %v1400_v41 }
 0x265   : > { %v1246_v5 = vpop.f32.mrf.mxu0 }
 0x266   : > { %v1335_v6 = vpop.f32.mrf.mxu1  ;;  %1801 = vmatmul.bf16.gmra.mxu3 %v4064_v13  ;;  %v4067_v15 = vpack.c.bf16 %v2015_v1, %v2013_v0  ;;  %v1247_v19 = vadd.f32 %v1246_v5, %v3841_v4 }
 0x267   : > { %v1673_v50 = vpop.f32.mrf.mxu2 }
 0x268   : > { %v1674_v3 = vadd.f32 %v1673_v50, %v4016_v8  ;;  %1855 = vmatmul.bf16.gmra.mxu0 %v3790_v61  ;;  %v1336_v56 = vadd.f32 %v1335_v6, %v1247_v19 }
 0x269   : > { %1944 = vmatmul.bf16.gmra.mxu1 %v3948_v10  ;;  %v1762_v18 = vpop.f32.mrf.mxu3 }
 0x26a   : > { %v1763_v22 = vadd.f32 %v1762_v18, %v1674_v3  ;;  %v1404_v37 = vmax.f32 %v1336_v56, 0.0 }
 0x26c   : > { %v2017_v61 = vmax.f32 %v1763_v22, 0.0 }
 0x26d   : > { %v1248_v17 = vpop.f32.mrf.mxu0 }
 0x26e   : > { %v1249_v34 = vadd.f32 %v1248_v17, %v3841_v4  ;;  %v1337_v23 = vpop.f32.mrf.mxu1 }
 0x26f   : > { %v1675_v26 = vpop.f32.mrf.mxu2 }
 0x270   : > { %v1338_v39 = vadd.f32 %v1337_v23, %v1249_v34  ;;  %v1676_v29 = vadd.f32 %v1675_v26, %v4016_v8 }
 0x271   : > { %v1764_v35 = vpop.f32.mrf.mxu3 }
 0x272   : > { %v1406_v38 = vmax.f32 %v1338_v39, 0.0  ;;  %v1765_v31 = vadd.f32 %v1764_v35, %v1676_v29 }
 0x274   : > { %v2019_v20 = vmax.f32 %v1765_v31, 0.0  ;;  %1717 = vmatmul.bf16.gmra.mxu2 %v3969_v60  ;;  %v4076_v10 = vpack.c.bf16 %v1406_v38, %v1404_v37 }
 0x275   : > { %v1251_v45 = vpop.f32.mrf.mxu0 }
 0x276   : > { %v1340_v57 = vpop.f32.mrf.mxu1  ;;  %1806 = vmatmul.bf16.gmra.mxu3 %v4076_v10  ;;  %v4082_v53 = vpack.c.bf16 %v2019_v20, %v2017_v61  ;;  %v1252_v32 = vadd.f32 %v1251_v45, %v3841_v4 }
 0x277   : > { %v1678_v58 = vpop.f32.mrf.mxu2 }
 0x278   : > { %v1679_v16 = vadd.f32 %v1678_v58, %v4016_v8  ;;  %1860 = vmatmul.bf16.gmra.mxu0 %v3821_v44  ;;  %v1341_v51 = vadd.f32 %v1340_v57, %v1252_v32 }
 0x279   : > { %1949 = vmatmul.bf16.gmra.mxu1 %v3966_v52  ;;  %v1767_v54 = vpop.f32.mrf.mxu3 }
 0x27a   : > { %v1768_v62 = vadd.f32 %v1767_v54, %v1679_v16  ;;  %v1408_v52 = vmax.f32 %v1341_v51, 0.0 }
 0x27c   : > { %v2021_v5 = vmax.f32 %v1768_v62, 0.0 }
 0x27d   : > { %v1253_v27 = vpop.f32.mrf.mxu0 }
 0x27e   : > { %v1254_v25 = vadd.f32 %v1253_v27, %v3841_v4  ;;  %v1342_v55 = vpop.f32.mrf.mxu1 }
 0x27f   : > { %v1680_v41 = vpop.f32.mrf.mxu2 }
 0x280   : > { %v1343_v46 = vadd.f32 %v1342_v55, %v1254_v25  ;;  %v1681_v44 = vadd.f32 %v1680_v41, %v4016_v8 }
 0x281   : > { %v1769_v9 = vpop.f32.mrf.mxu3 }
 0x282   : > { %v1410_v0 = vmax.f32 %v1343_v46, 0.0  ;;  %v1770_v1 = vadd.f32 %v1769_v9, %v1681_v44 }
 0x284   : > { %v2023_v6 = vmax.f32 %v1770_v1, 0.0  ;;  %1722 = vmatmul.bf16.gmra.mxu2 %v3984_v28  ;;  %v4094_v50 = vpack.c.bf16 %v1410_v0, %v1408_v52 }
 0x285   : > { %v1256_v3 = vpop.f32.mrf.mxu0 }
 0x286   : > { %v1345_v18 = vpop.f32.mrf.mxu1  ;;  %1811 = vmatmul.bf16.gmra.mxu3 %v4094_v50  ;;  %v4097_v19 = vpack.c.bf16 %v2023_v6, %v2021_v5  ;;  %v1257_v34 = vadd.f32 %v1256_v3, %v3841_v4 }
 0x287   : > { %v1683_v22 = vpop.f32.mrf.mxu2 }
 0x288   : > { %v1684_v17 = vadd.f32 %v1683_v22, %v4016_v8  ;;  %1865 = vmatmul.bf16.gmra.mxu0 %v3843_v33  ;;  %v1346_v39 = vadd.f32 %v1345_v18, %v1257_v34  ;;  %v4121_v22 = vperm.slane %v4010_v11, 1 }
 0x289   : > { %1954 = vmatmul.bf16.gmra.mxu1 %v3978_v40  ;;  %v1772_v56 = vpop.f32.mrf.mxu3 }
 0x28a   : > { %v1773_v23 = vadd.f32 %v1772_v56, %v1684_v17  ;;  %v1412_v20 = vmax.f32 %v1346_v39, 0.0 }
 0x28c   : > { %v2025_v33 = vmax.f32 %v1773_v23, 0.0 }
 0x28d   : > { %v1258_v26 = vpop.f32.mrf.mxu0 }
 0x28e   : > { %v1259_v29 = vadd.f32 %v1258_v26, %v3841_v4  ;;  %v1347_v35 = vpop.f32.mrf.mxu1 }
 0x28f   : > { %v1685_v37 = vpop.f32.mrf.mxu2 }
 0x290   : > { %v1348_v38 = vadd.f32 %v1347_v35, %v1259_v29  ;;  %v1686_v31 = vadd.f32 %v1685_v37, %v4016_v8 }
 0x291   : > { %v1774_v61 = vpop.f32.mrf.mxu3 }
 0x292   : > { %v1414_v42 = vmax.f32 %v1348_v38, 0.0  ;;  %v1775_v45 = vadd.f32 %v1774_v61, %v1686_v31 }
 0x294   : > { %v2027_v57 = vmax.f32 %v1775_v45, 0.0  ;;  %1727 = vmatmul.bf16.gmra.mxu2 %v3999_v14  ;;  %v4106_v40 = vpack.c.bf16 %v1414_v42, %v1412_v20 }
 0x295   : > { %v1261_v58 = vpop.f32.mrf.mxu0 }
 0x296   : > { %v1350_v16 = vpop.f32.mrf.mxu1  ;;  %1816 = vmatmul.bf16.gmra.mxu3 %v4106_v40  ;;  %v4109_v54 = vpack.c.bf16 %v2027_v57, %v2025_v33  ;;  %v1262_v27 = vadd.f32 %v1261_v58, %v3841_v4 }
 0x297   : > { %v1688_v32 = vpop.f32.mrf.mxu2 }
 0x298   : > { %v1689_v62 = vadd.f32 %v1688_v32, %v4016_v8  ;;  %1870 = vmatmul.bf16.gmra.mxu0 %v3870_v63  ;;  %v1351_v55 = vadd.f32 %v1350_v16, %v1262_v27 }
 0x299   : > { %1959 = vmatmul.bf16.gmra.mxu1 %v3996_v59  ;;  %v1777_v48 = vpop.f32.mrf.mxu3 }
 0x29a   : > { %v1778_v51 = vadd.f32 %v1777_v48, %v1689_v62  ;;  %v1416_v1 = vmax.f32 %v1351_v55, 0.0 }
 0x29c   : > { %v2029_v63 = vmax.f32 %v1778_v51, 0.0 }
 0x29d   : > { %v1263_v25 = vpop.f32.mrf.mxu0 }
 0x29e   : > { %v1264_v41 = vadd.f32 %v1263_v25, %v3841_v4  ;;  %v1352_v46 = vpop.f32.mrf.mxu1 }
 0x29f   : > { %v1690_v44 = vpop.f32.mrf.mxu2 }
 0x2a0   : > { %v1353_v9 = vadd.f32 %v1352_v46, %v1264_v41  ;;  %v1691_v52 = vadd.f32 %v1690_v44, %v4016_v8 }
 0x2a1   : > { %v1779_v0 = vpop.f32.mrf.mxu3 }
 0x2a2   : > { %v1418_v5 = vmax.f32 %v1353_v9, 0.0  ;;  %v1780_v6 = vadd.f32 %v1779_v0, %v1691_v52 }
 0x2a4   : > { %v2031_v3 = vmax.f32 %v1780_v6, 0.0  ;;  %1732 = vmatmul.bf16.gmra.mxu2 %v4022_v30  ;;  %v4118_v59 = vpack.c.bf16 %v1418_v5, %v1416_v1 }
 0x2a5   : > { %v1836_v18 = vpop.f32.mrf.mxu0 }
 0x2a6   : > { %v1925_v4 = vpop.f32.mrf.mxu1  ;;  %1821 = vmatmul.bf16.gmra.mxu3 %v4118_v59  ;;  %v4124_v17 = vpack.c.bf16 %v2031_v3, %v2029_v63  ;;  %v1837_v26 = vadd.f32 %v1836_v18, %v4121_v22 }
 0x2a7   : > { %v1693_v56 = vpop.f32.mrf.mxu2 }
 0x2a8   : > { %v1694_v34 = vadd.f32 %v1693_v56, %v4016_v8  ;;  %1875 = vmatmul.bf16.gmra.mxu0 %v3885_v7  ;;  %v1926_v35 = vadd.f32 %v1925_v4, %v1837_v26 }
 0x2a9   : > { %1964 = vmatmul.bf16.gmra.mxu1 %v4013_v36  ;;  %v1782_v23 = vpop.f32.mrf.mxu3 }
 0x2aa   : > { %v1783_v39 = vadd.f32 %v1782_v23, %v1694_v34  ;;  %v2006_v42 = vmax.f32 %v1926_v35, 0.0 }
 0x2ac   : > { %v2033_v7 = vmax.f32 %v1783_v39, 0.0 }
 0x2ad   : > { %v1838_v29 = vpop.f32.mrf.mxu0 }
 0x2ae   : > { %v1839_v11 = vadd.f32 %v1838_v29, %v4121_v22  ;;  %v1927_v37 = vpop.f32.mrf.mxu1 }
 0x2af   : > { %v1695_v38 = vpop.f32.mrf.mxu2 }
 0x2b0   : > { %v1928_v31 = vadd.f32 %v1927_v37, %v1839_v11  ;;  %v1696_v61 = vadd.f32 %v1695_v38, %v4016_v8 }
 0x2b1   : > { %v1784_v20 = vpop.f32.mrf.mxu3 }
 0x2b2   : > { %v2008_v45 = vmax.f32 %v1928_v31, 0.0  ;;  %v1785_v33 = vadd.f32 %v1784_v20, %v1696_v61 }
 0x2b4   : > { %v2070_v57 = vpack.c.bf16 %v2008_v45, %v2006_v42  ;;  %v2035_v36 = vmax.f32 %v1785_v33, 0.0  ;;  %2241 = vmatmul.bf16.vlgmr.msra.gmra.mxu2 %v4036_v12 }
 0x2b5   : > { %v1841_v58 = vpop.f32.mrf.mxu0 }
 0x2b6   : > { %v1930_v16 = vpop.f32.mrf.mxu1  ;;  %2330 = vmatmul.bf16.vlgmr.msra.gmra.mxu3 %v2070_v57  ;;  %v4133_v32 = vpack.c.bf16 %v2035_v36, %v2033_v7  ;;  %v1842_v51 = vadd.f32 %v1841_v58, %v4121_v22 }
 0x2b7   : > { %v1698_v62 = vpop.f32.mrf.mxu2 }
 0x2b8   : > { %v1699_v48 = vadd.f32 %v1698_v62, %v4016_v8  ;;  %1880 = vmatmul.bf16.gmra.mxu0 %v3912_v49  ;;  %v1931_v41 = vadd.f32 %v1930_v16, %v1842_v51 }
 0x2b9   : > { %1969 = vmatmul.bf16.gmra.mxu1 %v4034_v47  ;;  %v1787_v27 = vpop.f32.mrf.mxu3 }
 0x2ba   : > { %v1788_v25 = vadd.f32 %v1787_v27, %v1699_v48  ;;  %v2010_v1 = vmax.f32 %v1931_v41, 0.0 }
 0x2bc   : > { %v2037_v49 = vmax.f32 %v1788_v25, 0.0 }
 0x2bd   : > { %v1843_v55 = vpop.f32.mrf.mxu0 }
 0x2be   : > { %v1844_v12 = vadd.f32 %v1843_v55, %v4121_v22  ;;  %v1932_v46 = vpop.f32.mrf.mxu1 }
 0x2bf   : > { %v1700_v44 = vpop.f32.mrf.mxu2 }
 0x2c0   : > { %v1933_v9 = vadd.f32 %v1932_v46, %v1844_v12  ;;  %v1701_v52 = vadd.f32 %v1700_v44, %v4016_v8 }
 0x2c1   : > { %v1789_v0 = vpop.f32.mrf.mxu3 }
 0x2c2   : > { %v2012_v5 = vmax.f32 %v1933_v9, 0.0  ;;  %v1790_v6 = vadd.f32 %v1789_v0, %v1701_v52 }
 0x2c4   : > { %v2039_v63 = vmax.f32 %v1790_v6, 0.0  ;;  %2246 = vmatmul.bf16.gmra.mxu2 %v4052_v21  ;;  %v2072_v47 = vpack.c.bf16 %v2012_v5, %v2010_v1 }
 0x2c5   : > { %v1846_v3 = vpop.f32.mrf.mxu0 }
 0x2c6   : > { %v1935_v18 = vpop.f32.mrf.mxu1  ;;  %2335 = vmatmul.bf16.gmra.mxu3 %v2072_v47  ;;  %v4142_v4 = vpack.c.bf16 %v2039_v63, %v2037_v49  ;;  %v1847_v26 = vadd.f32 %v1846_v3, %v4121_v22 }
 0x2c7   : > { %v1703_v56 = vpop.f32.mrf.mxu2 }
 0x2c8   : > { %v1704_v34 = vadd.f32 %v1703_v56, %v4016_v8  ;;  %1885 = vmatmul.bf16.gmra.mxu0 %v3927_v43  ;;  %v1936_v35 = vadd.f32 %v1935_v18, %v1847_v26 }
 0x2c9   : > { %1974 = vmatmul.bf16.gmra.mxu1 %v4046_v2  ;;  %v1792_v23 = vpop.f32.mrf.mxu3 }
 0x2ca   : > { %v1793_v39 = vadd.f32 %v1792_v23, %v1704_v34  ;;  %v2014_v20 = vmax.f32 %v1936_v35, 0.0 }
 0x2cc   : > { %v2041_v43 = vmax.f32 %v1793_v39, 0.0 }
 0x2cd   : > { %v1848_v29 = vpop.f32.mrf.mxu0 }
 0x2ce   : > { %v1849_v21 = vadd.f32 %v1848_v29, %v4121_v22  ;;  %v1937_v11 = vpop.f32.mrf.mxu1 }
 0x2cf   : > { %v1705_v37 = vpop.f32.mrf.mxu2 }
 0x2d0   : > { %v1938_v38 = vadd.f32 %v1937_v11, %v1849_v21  ;;  %v1706_v31 = vadd.f32 %v1705_v37, %v4016_v8 }
 0x2d1   : > { %v1794_v61 = vpop.f32.mrf.mxu3 }
 0x2d2   : > { %v2016_v42 = vmax.f32 %v1938_v38, 0.0  ;;  %v1795_v45 = vadd.f32 %v1794_v61, %v1706_v31 }
 0x2d4   : > { %v2043_v33 = vmax.f32 %v1795_v45, 0.0  ;;  %2251 = vmatmul.bf16.gmra.mxu2 %v4067_v15  ;;  %v2074_v2 = vpack.c.bf16 %v2016_v42, %v2014_v20 }
 0x2d5   : > { %v1851_v7 = vpop.f32.mrf.mxu0 }
 0x2d6   : > { %v1940_v57 = vpop.f32.mrf.mxu1  ;;  %2340 = vmatmul.bf16.gmra.mxu3 %v2074_v2  ;;  %v4151_v36 = vpack.c.bf16 %v2043_v33, %v2041_v43  ;;  %v1852_v48 = vadd.f32 %v1851_v7, %v4121_v22 }
 0x2d7   : > { %v1708_v58 = vpop.f32.mrf.mxu2 }
 0x2d8   : > { %v1709_v16 = vadd.f32 %v1708_v58, %v4016_v8  ;;  %1890 = vmatmul.bf16.gmra.mxu0 %v3954_v24  ;;  %v1941_v25 = vadd.f32 %v1940_v57, %v1852_v48 }
 0x2d9   : > { %1979 = vmatmul.bf16.gmra.mxu1 %v4064_v13  ;;  %v1797_v62 = vpop.f32.mrf.mxu3 }
 0x2da   : > { %v1798_v27 = vadd.f32 %v1797_v62, %v1709_v16  ;;  %v2018_v9 = vmax.f32 %v1941_v25, 0.0 }
 0x2dc   : > { %v2045_v24 = vmax.f32 %v1798_v27, 0.0 }
 0x2dd   : > { %v1853_v51 = vpop.f32.mrf.mxu0 }
 0x2de   : > { %v1854_v15 = vadd.f32 %v1853_v51, %v4121_v22  ;;  %v1942_v55 = vpop.f32.mrf.mxu1 }
 0x2df   : > { %v1710_v41 = vpop.f32.mrf.mxu2 }
 0x2e0   : > { %v1943_v12 = vadd.f32 %v1942_v55, %v1854_v15  ;;  %v1711_v46 = vadd.f32 %v1710_v41, %v4016_v8 }
 0x2e1   : > { %v1799_v44 = vpop.f32.mrf.mxu3 }
 0x2e2   : > { %v2020_v52 = vmax.f32 %v1943_v12, 0.0  ;;  %v1800_v0 = vadd.f32 %v1799_v44, %v1711_v46 }
 0x2e4   : > { %v2047_v1 = vmax.f32 %v1800_v0, 0.0  ;;  %2256 = vmatmul.bf16.gmra.mxu2 %v4082_v53  ;;  %v2076_v13 = vpack.c.bf16 %v2020_v52, %v2018_v9 }
 0x2e5   : > { %v1856_v5 = vpop.f32.mrf.mxu0 }
 0x2e6   : > { %v1945_v6 = vpop.f32.mrf.mxu1  ;;  %2345 = vmatmul.bf16.gmra.mxu3 %v2076_v13  ;;  %v4160_v49 = vpack.c.bf16 %v2047_v1, %v2045_v24  ;;  %v1857_v18 = vadd.f32 %v1856_v5, %v4121_v22 }
 0x2e7   : > { %v1713_v63 = vpop.f32.mrf.mxu2 }
 0x2e8   : > { %v1714_v47 = vadd.f32 %v1713_v63, %v4016_v8  ;;  %1895 = vmatmul.bf16.gmra.mxu0 %v3969_v60  ;;  %v1946_v23 = vadd.f32 %v1945_v6, %v1857_v18 }
 0x2e9   : > { %1984 = vmatmul.bf16.gmra.mxu1 %v4076_v10  ;;  %v1802_v3 = vpop.f32.mrf.mxu3 }
 0x2ea   : > { %v1803_v56 = vadd.f32 %v1802_v3, %v1714_v47  ;;  %v2022_v11 = vmax.f32 %v1946_v23, 0.0 }
 0x2ec   : > { %v2049_v60 = vmax.f32 %v1803_v56, 0.0 }
 0x2ed   : > { %v1858_v34 = vpop.f32.mrf.mxu0 }
 0x2ee   : > { %v1859_v53 = vadd.f32 %v1858_v34, %v4121_v22  ;;  %v1947_v26 = vpop.f32.mrf.mxu1 }
 0x2ef   : > { %v1715_v39 = vpop.f32.mrf.mxu2 }
 0x2f0   : > { %v1948_v29 = vadd.f32 %v1947_v26, %v1859_v53  ;;  %v1716_v35 = vadd.f32 %v1715_v39, %v4016_v8 }
 0x2f1   : > { %v1804_v21 = vpop.f32.mrf.mxu3 }
 0x2f2   : > { %v2024_v37 = vmax.f32 %v1948_v29, 0.0  ;;  %v1805_v38 = vadd.f32 %v1804_v21, %v1716_v35 }
 0x2f4   : > { %v2078_v31 = vpack.c.bf16 %v2024_v37, %v2022_v11  ;;  %v2051_v10 = vmax.f32 %v1805_v38, 0.0  ;;  %2261 = vmatmul.bf16.gmra.mxu2 %v4097_v19 }
 0x2f5   : > { %v1861_v61 = vpop.f32.mrf.mxu0 }
 0x2f6   : > { %v1950_v20 = vpop.f32.mrf.mxu1  ;;  %2350 = vmatmul.bf16.gmra.mxu3 %v2078_v31  ;;  %v4169_v42 = vpack.c.bf16 %v2051_v10, %v2049_v60  ;;  %v1862_v2 = vadd.f32 %v1861_v61, %v4121_v22 }
 0x2f7   : > { %v1718_v45 = vpop.f32.mrf.mxu2 }
 0x2f8   : > { %v1719_v43 = vadd.f32 %v1718_v45, %v4016_v8  ;;  %1900 = vmatmul.bf16.gmra.mxu0 %v3984_v28  ;;  %v1951_v58 = vadd.f32 %v1950_v20, %v1862_v2 }
 0x2f9   : > { %1989 = vmatmul.bf16.gmra.mxu1 %v4094_v50  ;;  %v1807_v33 = vpop.f32.mrf.mxu3 }
 0x2fa   : > { %v1808_v7 = vadd.f32 %v1807_v33, %v1719_v43  ;;  %v2026_v25 = vmax.f32 %v1951_v58, 0.0 }
 0x2fc   : > { %v2053_v28 = vmax.f32 %v1808_v7, 0.0 }
 0x2fd   : > { %v1863_v57 = vpop.f32.mrf.mxu0 }
 0x2fe   : > { %v1864_v19 = vadd.f32 %v1863_v57, %v4121_v22  ;;  %v1952_v16 = vpop.f32.mrf.mxu1 }
 0x2ff   : > { %v1720_v62 = vpop.f32.mrf.mxu2 }
 0x300   : > { %v1953_v48 = vadd.f32 %v1952_v16, %v1864_v19  ;;  %v1721_v27 = vadd.f32 %v1720_v62, %v4016_v8 }
 0x301   : > { %v1809_v51 = vpop.f32.mrf.mxu3 }
 0x302   : > { %v2028_v15 = vmax.f32 %v1953_v48, 0.0  ;;  %v1810_v55 = vadd.f32 %v1809_v51, %v1721_v27 }
 0x304   : > { %v2080_v41 = vpack.c.bf16 %v2028_v15, %v2026_v25  ;;  %v2055_v50 = vmax.f32 %v1810_v55, 0.0  ;;  %2266 = vmatmul.bf16.gmra.mxu2 %v4109_v54 }
 0x305   : > { %v1866_v12 = vpop.f32.mrf.mxu0 }
 0x306   : > { %v1955_v46 = vpop.f32.mrf.mxu1  ;;  %2355 = vmatmul.bf16.gmra.mxu3 %v2080_v41  ;;  %v4178_v44 = vpack.c.bf16 %v2055_v50, %v2053_v28  ;;  %v1867_v24 = vadd.f32 %v1866_v12, %v4121_v22 }
 0x307   : > { %v1723_v9 = vpop.f32.mrf.mxu2 }
 0x308   : > { %v1724_v52 = vadd.f32 %v1723_v9, %v4016_v8  ;;  %1905 = vmatmul.bf16.gmra.mxu0 %v3999_v14  ;;  %v1956_v5 = vadd.f32 %v1955_v46, %v1867_v24 }
 0x309   : > { %1994 = vmatmul.bf16.gmra.mxu1 %v4106_v40  ;;  %v1812_v0 = vpop.f32.mrf.mxu3 }
 0x30a   : > { %v1813_v1 = vadd.f32 %v1812_v0, %v1724_v52  ;;  %v2030_v56 = vmax.f32 %v1956_v5, 0.0  ;;  %v4206_v5 = vld [vmem:[%s4331_s8] ss:$0 sm:$0xff] }
 0x30c   : > { %v2057_v14 = vmax.f32 %v1813_v1, 0.0 }
 0x30d   : > { %v1868_v13 = vpop.f32.mrf.mxu0 }
 0x30e   : > { %v1869_v54 = vadd.f32 %v1868_v13, %v4121_v22  ;;  %v1957_v6 = vpop.f32.mrf.mxu1 }
 0x30f   : > { %v1725_v63 = vpop.f32.mrf.mxu2 }
 0x310   : > { %v1958_v47 = vadd.f32 %v1957_v6, %v1869_v54  ;;  %v1726_v3 = vadd.f32 %v1725_v63, %v4016_v8 }
 0x311   : > { %v1814_v18 = vpop.f32.mrf.mxu3 }
 0x312   : > { %v2032_v34 = vmax.f32 %v1958_v47, 0.0  ;;  %v1815_v23 = vadd.f32 %v1814_v18, %v1726_v3 }
 0x314   : > { %v2082_v53 = vpack.c.bf16 %v2032_v34, %v2030_v56  ;;  %v2059_v40 = vmax.f32 %v1815_v23, 0.0  ;;  %2271 = vmatmul.bf16.gmra.mxu2 %v4124_v17 }
 0x315   : > { %v1871_v26 = vpop.f32.mrf.mxu0 }
 0x316   : > { %v1960_v39 = vpop.f32.mrf.mxu1  ;;  %2360 = vmatmul.bf16.gmra.mxu3 %v2082_v53  ;;  %v4187_v29 = vpack.c.bf16 %v2059_v40, %v2057_v14  ;;  %v1872_v37 = vadd.f32 %v1871_v26, %v4121_v22 }
 0x317   : > { %v1728_v35 = vpop.f32.mrf.mxu2 }
 0x318   : > { %v1729_v21 = vadd.f32 %v1728_v35, %v4016_v8  ;;  %1910 = vmatmul.bf16.gmra.mxu0 %v4022_v30  ;;  %v1961_v31 = vadd.f32 %v1960_v39, %v1872_v37 }
 0x319   : > { %1999 = vmatmul.bf16.gmra.mxu1 %v4118_v59  ;;  %v1817_v11 = vpop.f32.mrf.mxu3 }
 0x31a   : > { %v1818_v38 = vadd.f32 %v1817_v11, %v1729_v21  ;;  %v2034_v33 = vmax.f32 %v1961_v31, 0.0 }
 0x31c   : > { %v2061_v30 = vmax.f32 %v1818_v38, 0.0 }
 0x31d   : > { %v1873_v60 = vpop.f32.mrf.mxu0 }
 0x31e   : > { %v1874_v17 = vadd.f32 %v1873_v60, %v4121_v22  ;;  %v1962_v10 = vpop.f32.mrf.mxu1 }
 0x31f   : > { %v1730_v61 = vpop.f32.mrf.mxu2 }
 0x320   : > { %v1963_v20 = vadd.f32 %v1962_v10, %v1874_v17  ;;  %v1731_v45 = vadd.f32 %v1730_v61, %v4016_v8 }
 0x321   : > { %v1819_v43 = vpop.f32.mrf.mxu3 }
 0x322   : > { %v2036_v2 = vmax.f32 %v1963_v20, 0.0  ;;  %v1820_v7 = vadd.f32 %v1819_v43, %v1731_v45 }
 0x324   : > { %v2084_v57 = vpack.c.bf16 %v2036_v2, %v2034_v33  ;;  %v2063_v59 = vmax.f32 %v1820_v7, 0.0  ;;  %2276 = vmatmul.bf16.gmra.mxu2 %v4133_v32 }
 0x325   : > { %v1876_v58 = vpop.f32.mrf.mxu0 }
 0x326   : > { %v1965_v19 = vpop.f32.mrf.mxu1  ;;  %2365 = vmatmul.bf16.gmra.mxu3 %v2084_v57  ;;  %v4196_v16 = vpack.c.bf16 %v2063_v59, %v2061_v30  ;;  %v1877_v51 = vadd.f32 %v1876_v58, %v4121_v22 }
 0x327   : > { %v1733_v62 = vpop.f32.mrf.mxu2 }
 0x328   : > { %v1734_v48 = vadd.f32 %v1733_v62, %v4016_v8  ;;  %v1966_v55 = vadd.f32 %v1965_v19, %v1877_v51 }
 0x329   : > { %v1822_v27 = vpop.f32.mrf.mxu3 }
 0x32a   : > { %v1823_v25 = vadd.f32 %v1822_v27, %v1734_v48  ;;  %v2038_v9 = vmax.f32 %v1966_v55, 0.0 }
 0x32c   : > { %v2065_v24 = vmax.f32 %v1823_v25, 0.0 }
 0x32d   : > { %v1878_v15 = vpop.f32.mrf.mxu0 }
 0x32e   : > { %v1879_v28 = vadd.f32 %v1878_v15, %v4121_v22  ;;  %v1967_v41 = vpop.f32.mrf.mxu1 }
 0x32f   : > { %v1735_v50 = vpop.f32.mrf.mxu2 }
 0x330   : > { %v1968_v12 = vadd.f32 %v1967_v41, %v1879_v28  ;;  %v1736_v32 = vadd.f32 %v1735_v50, %v4016_v8 }
 0x331   : > { %v1824_v46 = vpop.f32.mrf.mxu3 }
 0x332   : > { %v2040_v52 = vmax.f32 %v1968_v12, 0.0  ;;  %v1825_v0 = vadd.f32 %v1824_v46, %v1736_v32 }
 0x334   : > { %v2086_v1 = vpack.c.bf16 %v2040_v52, %v2038_v9  ;;  %v2067_v13 = vmax.f32 %v1825_v0, 0.0  ;;  %2281 = vmatmul.bf16.gmra.mxu2 %v4142_v4 }
 0x335   : > { %v1881_v54 = vpop.f32.mrf.mxu0 }
 0x336   : > { %v1970_v6 = vpop.f32.mrf.mxu1  ;;  %2370 = vmatmul.bf16.gmra.mxu3 %v2086_v1  ;;  %v4208_v63 = vpack.c.bf16 %v2067_v13, %v2065_v24  ;;  %v1882_v18 = vadd.f32 %v1881_v54, %v4121_v22 }
 0x337   : > { %v2242_v8 = vpop.f32.mrf.mxu2 }
 0x338   : > { %v2243_v47 = vadd.f32 %v4206_v5, %v2242_v8  ;;  %v1971_v4 = vadd.f32 %v1970_v6, %v1882_v18 }
 0x339   : > { %v2331_v3 = vpop.f32.mrf.mxu3 }
 0x33a   : > { %v2332_v56 = vadd.f32 %v2331_v3, %v2243_v47  ;;  %v2042_v35 = vmax.f32 %v1971_v4, 0.0 }
 0x33c   : > { %2411 = vxpose.xlu0.b32.start [1/16] (narrow) %v2332_v56, 8 }
 0x33d   : > { %v1883_v34 = vpop.f32.mrf.mxu0 }
 0x33e   : > { %v1884_v23 = vadd.f32 %v1883_v34, %v4121_v22  ;;  %v1972_v14 = vpop.f32.mrf.mxu1 }
 0x33f   : > { %v2244_v53 = vpop.f32.mrf.mxu2 }
 0x340   : > { %v1973_v40 = vadd.f32 %v1972_v14, %v1884_v23  ;;  %v2245_v26 = vadd.f32 %v4206_v5, %v2244_v53 }
 0x341   : > { %v2333_v39 = vpop.f32.mrf.mxu3 }
 0x342   : > { %v2044_v21 = vmax.f32 %v1973_v40, 0.0  ;;  %v2334_v11 = vadd.f32 %v2333_v39, %v2245_v26 }
 0x344   : > { %v2088_v37 = vpack.c.bf16 %v2044_v21, %v2042_v35  ;;  %2286 = vmatmul.bf16.gmra.mxu2 %v4151_v36  ;;  %2412 = vxpose.xlu0.b32.cont [2/16] (narrow) %v2334_v11, 8 }
 0x345   : > { %v1886_v38 = vpop.f32.mrf.mxu0 }
 0x346   : > { %v1975_v60 = vpop.f32.mrf.mxu1  ;;  %2375 = vmatmul.bf16.gmra.mxu3 %v2088_v37  ;;  %v1887_v61 = vadd.f32 %v1886_v38, %v4121_v22 }
 0x347   : > { %v2247_v31 = vpop.f32.mrf.mxu2 }
 0x348   : > { %v2248_v17 = vadd.f32 %v4206_v5, %v2247_v31  ;;  %v1976_v43 = vadd.f32 %v1975_v60, %v1887_v61 }
 0x349   : > { %v2336_v10 = vpop.f32.mrf.mxu3 }
 0x34a   : > { %v2337_v20 = vadd.f32 %v2336_v10, %v2248_v17  ;;  %v2046_v59 = vmax.f32 %v1976_v43, 0.0 }
 0x34c   : > { %2413 = vxpose.xlu0.b32.cont [3/16] (narrow) %v2337_v20, 8 }
 0x34d   : > { %v1888_v45 = vpop.f32.mrf.mxu0 }
 0x34e   : > { %v1889_v33 = vadd.f32 %v1888_v45, %v4121_v22  ;;  %v1977_v2 = vpop.f32.mrf.mxu1 }
 0x34f   : > { %v2249_v7 = vpop.f32.mrf.mxu2 }
 0x350   : > { %v1978_v30 = vadd.f32 %v1977_v2, %v1889_v33  ;;  %v2250_v36 = vadd.f32 %v4206_v5, %v2249_v7 }
 0x351   : > { %v2338_v57 = vpop.f32.mrf.mxu3 }
 0x352   : > { %v2048_v58 = vmax.f32 %v1978_v30, 0.0  ;;  %v2339_v19 = vadd.f32 %v2338_v57, %v2250_v36 }
 0x354   : > { %v2090_v62 = vpack.c.bf16 %v2048_v58, %v2046_v59  ;;  %2291 = vmatmul.bf16.gmra.mxu2 %v4160_v49  ;;  %2414 = vxpose.xlu0.b32.cont [4/16] (narrow) %v2339_v19, 8 }
 0x355   : > { %v1891_v48 = vpop.f32.mrf.mxu0 }
 0x356   : > { %v1980_v27 = vpop.f32.mrf.mxu1  ;;  %2380 = vmatmul.bf16.gmra.mxu3 %v2090_v62  ;;  %v1892_v55 = vadd.f32 %v1891_v48, %v4121_v22 }
 0x357   : > { %v2252_v51 = vpop.f32.mrf.mxu2 }
 0x358   : > { %v2253_v25 = vadd.f32 %v4206_v5, %v2252_v51  ;;  %v1981_v50 = vadd.f32 %v1980_v27, %v1892_v55 }
 0x359   : > { %v2341_v15 = vpop.f32.mrf.mxu3 }
 0x35a   : > { %v2342_v28 = vadd.f32 %v2341_v15, %v2253_v25  ;;  %v2050_v0 = vmax.f32 %v1981_v50, 0.0 }
 0x35c   : > { %2415 = vxpose.xlu0.b32.cont [5/16] (narrow) %v2342_v28, 8 }
 0x35d   : > { %v1893_v41 = vpop.f32.mrf.mxu0 }
 0x35e   : > { %v1894_v12 = vadd.f32 %v1893_v41, %v4121_v22  ;;  %v1982_v32 = vpop.f32.mrf.mxu1 }
 0x35f   : > { %v2254_v46 = vpop.f32.mrf.mxu2 }
 0x360   : > { %v1983_v9 = vadd.f32 %v1982_v32, %v1894_v12  ;;  %v2255_v49 = vadd.f32 %v4206_v5, %v2254_v46 }
 0x361   : > { %v2343_v52 = vpop.f32.mrf.mxu3 }
 0x362   : > { %v2052_v24 = vmax.f32 %v1983_v9, 0.0  ;;  %v2344_v1 = vadd.f32 %v2343_v52, %v2255_v49 }
 0x364   : > { %v2092_v13 = vpack.c.bf16 %v2052_v24, %v2050_v0  ;;  %2296 = vmatmul.bf16.gmra.mxu2 %v4169_v42  ;;  %2416 = vxpose.xlu0.b32.cont [6/16] (narrow) %v2344_v1, 8 }
 0x365   : > { %v1896_v54 = vpop.f32.mrf.mxu0 }
 0x366   : > { %v1985_v6 = vpop.f32.mrf.mxu1  ;;  %2385 = vmatmul.bf16.gmra.mxu3 %v2092_v13  ;;  %v1897_v18 = vadd.f32 %v1896_v54, %v4121_v22 }
 0x367   : > { %v2257_v8 = vpop.f32.mrf.mxu2 }
 0x368   : > { %v2258_v47 = vadd.f32 %v4206_v5, %v2257_v8  ;;  %v1986_v4 = vadd.f32 %v1985_v6, %v1897_v18 }
 0x369   : > { %v2346_v3 = vpop.f32.mrf.mxu3 }
 0x36a   : > { %v2347_v56 = vadd.f32 %v2346_v3, %v2258_v47  ;;  %v2054_v39 = vmax.f32 %v1986_v4, 0.0 }
 0x36c   : > { %2417 = vxpose.xlu0.b32.cont [7/16] (narrow) %v2347_v56, 8 }
 0x36d   : > { %v1898_v34 = vpop.f32.mrf.mxu0 }
 0x36e   : > { %v1899_v23 = vadd.f32 %v1898_v34, %v4121_v22  ;;  %v1987_v14 = vpop.f32.mrf.mxu1 }
 0x36f   : > { %v2259_v53 = vpop.f32.mrf.mxu2 }
 0x370   : > { %v1988_v40 = vadd.f32 %v1987_v14, %v1899_v23  ;;  %v2260_v42 = vadd.f32 %v4206_v5, %v2259_v53 }
 0x371   : > { %v2348_v26 = vpop.f32.mrf.mxu3 }
 0x372   : > { %v2056_v35 = vmax.f32 %v1988_v40, 0.0  ;;  %v2349_v21 = vadd.f32 %v2348_v26, %v2260_v42 }
 0x374   : > { %v2094_v11 = vpack.c.bf16 %v2056_v35, %v2054_v39  ;;  %2301 = vmatmul.bf16.gmra.mxu2 %v4178_v44  ;;  %2418 = vxpose.xlu0.b32.cont [8/16] (narrow) %v2349_v21, 8 }
 0x375   : > { %v1901_v37 = vpop.f32.mrf.mxu0 }
 0x376   : > { %v1990_v38 = vpop.f32.mrf.mxu1  ;;  %2390 = vmatmul.bf16.gmra.mxu3 %v2094_v11  ;;  %v1902_v10 = vadd.f32 %v1901_v37, %v4121_v22 }
 0x377   : > { %v2262_v60 = vpop.f32.mrf.mxu2 }
 0x378   : > { %v2263_v31 = vadd.f32 %v4206_v5, %v2262_v60  ;;  %v1991_v45 = vadd.f32 %v1990_v38, %v1902_v10 }
 0x379   : > { %v2351_v17 = vpop.f32.mrf.mxu3 }
 0x37a   : > { %v2352_v61 = vadd.f32 %v2351_v17, %v2263_v31  ;;  %v2058_v36 = vmax.f32 %v1991_v45, 0.0 }
 0x37c   : > { %2419 = vxpose.xlu0.b32.cont [9/16] (narrow) %v2352_v61, 8 }
 0x37d   : > { %v1903_v20 = vpop.f32.mrf.mxu0 }
 0x37e   : > { %v1904_v43 = vadd.f32 %v1903_v20, %v4121_v22  ;;  %v1992_v33 = vpop.f32.mrf.mxu1 }
 0x37f   : > { %v2264_v2 = vpop.f32.mrf.mxu2 }
 0x380   : > { %v1993_v7 = vadd.f32 %v1992_v33, %v1904_v43  ;;  %v2265_v44 = vadd.f32 %v4206_v5, %v2264_v2 }
 0x381   : > { %v2353_v30 = vpop.f32.mrf.mxu3 }
 0x382   : > { %v2060_v57 = vmax.f32 %v1993_v7, 0.0  ;;  %v2354_v59 = vadd.f32 %v2353_v30, %v2265_v44 }
 0x384   : > { %v2096_v58 = vpack.c.bf16 %v2060_v57, %v2058_v36  ;;  %2306 = vmatmul.bf16.gmra.mxu2 %v4187_v29  ;;  %2420 = vxpose.xlu0.b32.cont [10/16] (narrow) %v2354_v59, 8 }
 0x385   : > { %v1906_v19 = vpop.f32.mrf.mxu0 }
 0x386   : > { %v1995_v62 = vpop.f32.mrf.mxu1  ;;  %2395 = vmatmul.bf16.gmra.mxu3 %v2096_v58  ;;  %v1907_v25 = vadd.f32 %v1906_v19, %v4121_v22 }
 0x387   : > { %v2267_v48 = vpop.f32.mrf.mxu2 }
 0x388   : > { %v2268_v27 = vadd.f32 %v4206_v5, %v2267_v48  ;;  %v1996_v28 = vadd.f32 %v1995_v62, %v1907_v25 }
 0x389   : > { %v2356_v51 = vpop.f32.mrf.mxu3 }
 0x38a   : > { %v2357_v15 = vadd.f32 %v2356_v51, %v2268_v27  ;;  %v2062_v9 = vmax.f32 %v1996_v28, 0.0 }
 0x38c   : > { %2421 = vxpose.xlu0.b32.cont [11/16] (narrow) %v2357_v15, 8 }
 0x38d   : > { %v1908_v55 = vpop.f32.mrf.mxu0 }
 0x38e   : > { %v1909_v41 = vadd.f32 %v1908_v55, %v4121_v22  ;;  %v1997_v50 = vpop.f32.mrf.mxu1 }
 0x38f   : > { %v2269_v12 = vpop.f32.mrf.mxu2 }
 0x390   : > { %v1998_v32 = vadd.f32 %v1997_v50, %v1909_v41  ;;  %v2270_v29 = vadd.f32 %v4206_v5, %v2269_v12 }
 0x391   : > { %v2358_v46 = vpop.f32.mrf.mxu3 }
 0x392   : > { %v2064_v49 = vmax.f32 %v1998_v32, 0.0  ;;  %v2359_v52 = vadd.f32 %v2358_v46, %v2270_v29 }
 0x394   : > { %v2098_v0 = vpack.c.bf16 %v2064_v49, %v2062_v9  ;;  %2311 = vmatmul.bf16.gmra.mxu2 %v4196_v16  ;;  %2422 = vxpose.xlu0.b32.cont [12/16] (narrow) %v2359_v52, 8 }
 0x395   : > { %v1911_v24 = vpop.f32.mrf.mxu0 }
 0x396   : > { %v2000_v1 = vpop.f32.mrf.mxu1  ;;  %2400 = vmatmul.bf16.gmra.mxu3 %v2098_v0  ;;  %v1912_v8 = vadd.f32 %v1911_v24, %v4121_v22 }
 0x397   : > { %v2272_v13 = vpop.f32.mrf.mxu2 }
 0x398   : > { %v2273_v54 = vadd.f32 %v4206_v5, %v2272_v13  ;;  %v2001_v18 = vadd.f32 %v2000_v1, %v1912_v8 }
 0x399   : > { %v2361_v6 = vpop.f32.mrf.mxu3 }
 0x39a   : > { %v2362_v47 = vadd.f32 %v2361_v6, %v2273_v54  ;;  %v2066_v53 = vmax.f32 %v2001_v18, 0.0 }
 0x39c   : > { %2423 = vxpose.xlu0.b32.cont [13/16] (narrow) %v2362_v47, 8 }
 0x39d   : > { %v1913_v3 = vpop.f32.mrf.mxu0 }
 0x39e   : > { %v1914_v56 = vadd.f32 %v1913_v3, %v4121_v22  ;;  %v2002_v34 = vpop.f32.mrf.mxu1 }
 0x39f   : > { %v2274_v4 = vpop.f32.mrf.mxu2 }
 0x3a0   : > { %v2003_v23 = vadd.f32 %v2002_v34, %v1914_v56  ;;  %v2275_v16 = vadd.f32 %v4206_v5, %v2274_v4 }
 0x3a1   : > { %v2363_v14 = vpop.f32.mrf.mxu3 }
 0x3a2   : > { %v2068_v40 = vmax.f32 %v2003_v23, 0.0  ;;  %v2364_v42 = vadd.f32 %v2363_v14, %v2275_v16 }
 0x3a4   : > { %v2100_v26 = vpack.c.bf16 %v2068_v40, %v2066_v53  ;;  %2316 = vmatmul.bf16.gmra.mxu2 %v4208_v63  ;;  %2424 = vxpose.xlu0.b32.cont [14/16] (narrow) %v2364_v42, 8 }
 0x3a6   : > { %2405 = vmatmul.bf16.gmra.mxu3 %v2100_v26 }
 0x3a7   : > { %v2277_v39 = vpop.f32.mrf.mxu2 }
 0x3a8   : > { %v2278_v35 = vadd.f32 %v4206_v5, %v2277_v39 }
 0x3a9   : > { %v2366_v21 = vpop.f32.mrf.mxu3 }
 0x3aa   : > { %v2367_v11 = vadd.f32 %v2366_v21, %v2278_v35 }
 0x3ac   : > { %2425 = vxpose.xlu0.b32.cont [15/16] (narrow) %v2367_v11, 8 }
 0x3af   : > { %v2279_v22 = vpop.f32.mrf.mxu2 }
 0x3b0   : > { %v2280_v37 = vadd.f32 %v4206_v5, %v2279_v22 }
 0x3b1   : > { %v2368_v38 = vpop.f32.mrf.mxu3 }
 0x3b2   : > { %v2369_v60 = vadd.f32 %v2368_v38, %v2280_v37 }
 0x3b4   : > { %2426 = vxpose.xlu0.b32.end [16/16] (narrow) %v2369_v60, 8 }
 0x3b7   : > { %v2282_v31 = vpop.f32.mrf.mxu2 }
 0x3b8   : > { %v2283_v17 = vadd.f32 %v4206_v5, %v2282_v31 }
 0x3b9   : > { %v2371_v10 = vpop.f32.mrf.mxu3 }
 0x3ba   : > { %v2372_v61 = vadd.f32 %v2371_v10, %v2283_v17  ;;  %v2481_v17 = vlaneseq }
 0x3bc   : > { %2443 = vxpose.xlu1.b32.start [1/16] (narrow) %v2372_v61, 8  ;;  %vm2483_vm4 = vcmp.lt.s32.totalorder %v2481_v17, 256 }
 0x3bf   : > { %v2284_v63 = vpop.f32.mrf.mxu2 }
 0x3c0   : > { %v2285_v20 = vadd.f32 %v4206_v5, %v2284_v63 }
 0x3c1   : > { %v2373_v45 = vpop.f32.mrf.mxu3 }
 0x3c2   : > { %v2374_v43 = vadd.f32 %v2373_v45, %v2285_v20 }
 0x3c4   : > { %2444 = vxpose.xlu1.b32.cont [2/16] (narrow) %v2374_v43, 8 }
 0x3c7   : > { %v2287_v33 = vpop.f32.mrf.mxu2 }
 0x3c8   : > { %v2288_v2 = vadd.f32 %v4206_v5, %v2287_v33 }
 0x3c9   : > { %v2376_v7 = vpop.f32.mrf.mxu3 }
 0x3ca   : > { %v2377_v44 = vadd.f32 %v2376_v7, %v2288_v2 }
 0x3cc   : > { %2445 = vxpose.xlu1.b32.cont [3/16] (narrow) %v2377_v44, 8 }
 0x3cf   : > { %v2289_v30 = vpop.f32.mrf.mxu2 }
 0x3d0   : > { %v2290_v36 = vadd.f32 %v4206_v5, %v2289_v30 }
 0x3d1   : > { %v2378_v57 = vpop.f32.mrf.mxu3 }
 0x3d2   : > { %v2379_v59 = vadd.f32 %v2378_v57, %v2290_v36 }
 0x3d4   : > { %2446 = vxpose.xlu1.b32.cont [4/16] (narrow) %v2379_v59, 8 }
 0x3d7   : > { %v2292_v58 = vpop.f32.mrf.mxu2 }
 0x3d8   : > { %v2293_v19 = vadd.f32 %v4206_v5, %v2292_v58 }
 0x3d9   : > { %v2381_v62 = vpop.f32.mrf.mxu3 }
 0x3da   : > { %v2382_v48 = vadd.f32 %v2381_v62, %v2293_v19 }
 0x3dc   : > { %2447 = vxpose.xlu1.b32.cont [5/16] (narrow) %v2382_v48, 8 }
 0x3df   : > { %v2294_v27 = vpop.f32.mrf.mxu2 }
 0x3e0   : > { %v2295_v51 = vadd.f32 %v4206_v5, %v2294_v27  ;;  %v2427_v61 = vpop.trf.xlu0 }
 0x3e1   : > { %v2383_v25 = vpop.f32.mrf.mxu3 }
 0x3e2   : > { %v2384_v15 = vadd.f32 %v2383_v25, %v2295_v51 }
 0x3e4   : > { %2448 = vxpose.xlu1.b32.cont [6/16] (narrow) %v2384_v15, 8 }
 0x3e7   : > { %v2297_v55 = vpop.f32.mrf.mxu2 }
 0x3e8   : > { %v2298_v28 = vadd.f32 %v4206_v5, %v2297_v55 }
 0x3e9   : > { %v2386_v41 = vpop.f32.mrf.mxu3 }
 0x3ea   : > { %v2387_v50 = vadd.f32 %v2386_v41, %v2298_v28 }
 0x3ec   : > { %2449 = vxpose.xlu1.b32.cont [7/16] (narrow) %v2387_v50, 8 }
 0x3ef   : > { %v2299_v12 = vpop.f32.mrf.mxu2 }
 0x3f0   : > { %v2300_v32 = vadd.f32 %v4206_v5, %v2299_v12 }
 0x3f1   : > { %v2388_v29 = vpop.f32.mrf.mxu3 }
 0x3f2   : > { %v2389_v46 = vadd.f32 %v2388_v29, %v2300_v32 }
 0x3f4   : > { %2450 = vxpose.xlu1.b32.cont [8/16] (narrow) %v2389_v46, 8 }
 0x3f7   : > { %v2302_v9 = vpop.f32.mrf.mxu2 }
 0x3f8   : > { %v2303_v49 = vadd.f32 %v4206_v5, %v2302_v9 }
 0x3f9   : > { %v2391_v52 = vpop.f32.mrf.mxu3 }
 0x3fa   : > { %v2392_v0 = vadd.f32 %v2391_v52, %v2303_v49 }
 0x3fc   : > { %2451 = vxpose.xlu1.b32.cont [9/16] (narrow) %v2392_v0, 8 }
 0x3ff   : > { %v2304_v24 = vpop.f32.mrf.mxu2 }
 0x400   : > { %v2305_v1 = vadd.f32 %v4206_v5, %v2304_v24 }
 0x401   : > { %v2393_v13 = vpop.f32.mrf.mxu3 }
 0x402   : > { %v2394_v54 = vadd.f32 %v2393_v13, %v2305_v1 }
 0x404   : > { %2452 = vxpose.xlu1.b32.cont [10/16] (narrow) %v2394_v54, 8 }
 0x407   : > { %v2307_v6 = vpop.f32.mrf.mxu2 }
 0x408   : > { %v2308_v8 = vadd.f32 %v4206_v5, %v2307_v6 }
 0x409   : > { %v2396_v47 = vpop.f32.mrf.mxu3 }
 0x40a   : > { %v2397_v3 = vadd.f32 %v2396_v47, %v2308_v8 }
 0x40c   : > { %2453 = vxpose.xlu1.b32.cont [11/16] (narrow) %v2397_v3, 8 }
 0x40f   : > { %v2309_v18 = vpop.f32.mrf.mxu2 }
 0x410   : > { %v2310_v56 = vadd.f32 %v4206_v5, %v2309_v18 }
 0x411   : > { %v2398_v34 = vpop.f32.mrf.mxu3 }
 0x412   : > { %v2399_v4 = vadd.f32 %v2398_v34, %v2310_v56 }
 0x414   : > { %2454 = vxpose.xlu1.b32.cont [12/16] (narrow) %v2399_v4, 8 }
 0x417   : > { %v2312_v23 = vpop.f32.mrf.mxu2 }
 0x418   : > { %v2313_v16 = vadd.f32 %v4206_v5, %v2312_v23 }
 0x419   : > { %v2401_v14 = vpop.f32.mrf.mxu3 }
 0x41a   : > { %v2402_v53 = vadd.f32 %v2401_v14, %v2313_v16 }
 0x41c   : > { %2455 = vxpose.xlu1.b32.cont [13/16] (narrow) %v2402_v53, 8 }
 0x41f   : > { %v2314_v40 = vpop.f32.mrf.mxu2 }
 0x420   : > { %v2315_v42 = vadd.f32 %v4206_v5, %v2314_v40 }
 0x421   : > { %v2403_v26 = vpop.f32.mrf.mxu3 }
 0x422   : > { %v2404_v39 = vadd.f32 %v2403_v26, %v2315_v42 }
 0x424   : > { %2456 = vxpose.xlu1.b32.cont [14/16] (narrow) %v2404_v39, 8 }
 0x427   : > { %v2317_v35 = vpop.f32.mrf.mxu2 }
 0x428   : > { %v2318_v21 = vadd.f32 %v4206_v5, %v2317_v35 }
 0x429   : > { %v2406_v11 = vpop.f32.mrf.mxu3 }
 0x42a   : > { %v2407_v22 = vadd.f32 %v2406_v11, %v2318_v21 }
 0x42c   : > { %2457 = vxpose.xlu1.b32.cont [15/16] (narrow) %v2407_v22, 8 }
 0x42f   : > { %v2319_v37 = vpop.f32.mrf.mxu2 }
 0x430   : > { %v2320_v38 = vadd.f32 %v4206_v5, %v2319_v37 }
 0x431   : > { %v2408_v60 = vpop.f32.mrf.mxu3 }
 0x432   : > { %v2409_v31 = vadd.f32 %v2408_v60, %v2320_v38 }
 0x434   : > { %2458 = vxpose.xlu1.b32.end [16/16] (narrow) %v2409_v31, 8 }
 0x460   : > { %v2459_v10 = vpop.trf.xlu1  ;;  %2493 = sbr.rel (!%p3356_p5) target bundleno = 1165 (0x48d), region = 68 }
 0x461   : > { %v2477_v63 = vrot.slane %v2459_v10, 7 }
 0x463   : > { %v2479_v20 = vsel %vm2478_vm3, %v2427_v61, %v2477_v63 }
 0x464   : > { %2485 = vst.msk [vmem:[%s372_s17] sm:$0x3] %vm2483_vm4, %v2479_v20 }
 0x465   : > { %s2968_s23 = sshll.u32 %s3339_s13, 1 }
 0x466   : > { %s2495_s21 = ssub.s32 3, %s2968_s23 }
 0x467   : > { %p2496_p0 = scmp.lt.s32.totalorder %s2495_s21, 2 }
 0x469   : > { %s4350_s21 = smov (!%p2496_p0, %s2495_s21), 2 }
 0x46a   : > { %s2498_s24 = ssub.s32 2, %s4350_s21 }
 0x46b   : > { %s2499_s25 = sshll.u32 %s2498_s24, 4 }
 0x46c   : > { %2500 = vsyncadd %s4268_s22, %s2499_s25  ;;  %p2969_p1 = scmp.ne.s32.totalorder %s4350_s21, 0  ;;  %s2502_s19 = scalar_lea.hbm %s4332_s9, %s2968_s23 }
 0x46d   : > { %s4335_s26 = sshll.u32 %s4350_s21, 4  ;;  %s4282_s29 = sshll.u32 %s372_s17, 4  ;;  %s4334_s29 = int_to_ptr.vmem [resolvable:$true] %s4282_s29 }
 0x46e   : > { %4339 = sst [smem:[#allocation11_spill]] %s4282_s29  ;;  %s2506_s13 = sshll.u32 %s2502_s19, 4  ;;  %s2507_s13 = int_to_ptr.hbm [resolvable:$true] %s2506_s13 }
 0x46f   : > { %s3179_s14 = sshra.s32 %s4334_s29, 4  ;;  %s3181_s16 = sshrl.u32 %s4335_s26, 4  ;;  %s3180_s14 = int_to_ptr.vmem [resolvable:$true] %s3179_s14 }
 0x470   : > { %s3186_s24 = scalar_lea.vmem %s3180_s14, %s3181_s16  ;;  %s3267_s25 = smov [#allocation7]  }
 0x471   : > { %p3187_p2 = scmp.ne.s32.totalorder %s3180_s14, %s3186_s24  ;;  %s3190_s23 = scalar_lea.vmem %s3267_s25, 4 }
 0x472   : > { %p3192_p5 = scmp.lt.s32.totalorder %s3190_s23, %s3186_s24 }
 0x473   : > { %p3188_p3 = pnand %p3187_p2, %p2969_p1 }
 0x475   : > { %p3189_p4 = pneg %p3188_p3 }
 0x477   : > { %p3194_p7 = pnand %p3192_p5, %p3189_p4 }
 0x479   : > { %3197 = shalt.err (!%p3194_p7)
}
 0x47a   : > { %s3198_s17 = sshra.s32 %s2507_s13, 4  ;;  %s3209_s14 = scalar_lea.hbm %s4332_s9, 3  ;;  %s3199_s17 = int_to_ptr.hbm [resolvable:$true] %s3198_s17 }
 0x47b   : > { %s3205_s27 = scalar_lea.hbm %s3199_s17, %s3181_s16  ;;  %p3210_p11 = scmp.lt.s32.totalorder %s3199_s17, %s4332_s9 }
 0x47c   : > { %p3206_p8 = scmp.ne.s32.totalorder %s3199_s17, %s3205_s27  ;;  %p3211_p12 = scmp.lt.s32.totalorder %s3209_s14, %s3205_s27 }
 0x47e   : > { %p3207_p9 = pnand %p3206_p8, %p2969_p1  ;;  %p3212_p13 = por %p3211_p12, %p3210_p11 }
 0x480   : > { %p3208_p10 = pneg %p3207_p9 }
 0x482   : > { %p3213_p0 = pnand %p3212_p13, %p3208_p10 }
 0x484   : > { %3216 = shalt.err (!%p3213_p0)
}
 0x485   : > { %s4340_s16 = sshll.u32 %s4350_s21, 4  ;;  %s4341_s24 = sld [smem:[#allocation11_spill]] }
 0x48b   : > { %s4342_s25 = int_to_ptr.vmem [resolvable:$true] %s4341_s24 }
 0x48c   : > { %2509 = dma.vmem_to_hbm [thread:$0]  (%p2969_p1), %s4342_s25, %s4340_s16, %s2507_s13, %s4268_s22  }
 0x48d PF: > { %p3080_p2 = scmp.ge.s32.totalorder %s3260_s12, 2  ;;  %s2518_s26 = sand.u32 1, %s3248_s30  }
 0x48e   : > { %s2519_s29 = scalar_lea.sflag [#allocation4], %s2518_s26 }
 0x48f   : > { %p3073_p3 = pnand %p3080_p2, %p3360_p6 }
 0x491   : > { %p3074_p4 = pneg %p3073_p3 }
 0x493   : > { %3243 = dma.done.wait (%p3074_p4), %s2519_s29, 32  }
 0x494   : > { %3245 = vsyncadd (%p3074_p4), %s2519_s29, 4294967264  ;;  %p21_p5 = scmp.ge.s32.totalorder %s3343_s15, 4   ;;  %s4343_s30 = smov %s3252_s10 }
 0x495   : > { %s4344_s10 = smov %s3256_s11  ;;  %s4345_s11 = smov %s3354_s18 }
 0x496   : > { %s4346_s12 = smov %s3343_s15  ;;  %23 = sbr.rel (!%p21_p5) target bundleno = 5 (0x5), region = 100 }
 0x49b   :  { %2525 = vsyncpa [#allocation3], 1 }
 0x49c   :  { %2527 = vsyncpa [#allocation3 + $0x1], 1 }
 0x49d   :  { %2528 = vsyncpa [#allocation6], 1 }
 0x49e   :  { %2529 = vsyncpa [#allocation4], 1 }
 0x49f   :  { %2531 = vsyncpa [#allocation4 + $0x1], 1 }

</bundles_post_ra>
